<compile_context>
chip_gen: v6e
topology: v6e:2x2x1
jax: 0.10.0
libtpu: 0.0.40
codegen_flags: <defaults>
</compile_context>

<pallas_src>
import functools
import math

import jax
import jax.numpy as jnp
from jax.experimental import pallas as pl
from jax.experimental.pallas import tpu as pltpu


def _round_up(x, m):
    return (x + m - 1) // m * m


def gcnii_kernel(adj_ref, feat_ref, ndst_ref, feat0_ref, w1_ref, bias_ref,
                 out_ref, acc_ref, *, alpha, beta):
    k = pl.program_id(1)

    @pl.when(k == 0)
    def _init():
        acc_ref[...] = jnp.zeros_like(acc_ref)

    # Hot loop: int8 adjacency -> bf16 cast feeding one bf16 MXU matmul per
    # (row-tile, src-tile).  Features are already source-normalized host-side,
    # so this is pure DMA + cast + MXU with an f32 VMEM accumulator.
    acc_ref[...] += jnp.dot(adj_ref[...].astype(jnp.bfloat16), feat_ref[...],
                            preferred_element_type=jnp.float32)

    # Epilogue: runs once per destination row tile, on the f32 accumulator.
    @pl.when(k == pl.num_programs(1) - 1)
    def _finalize():
        agg = acc_ref[...] * ndst_ref[...]
        f = (1.0 - alpha) * agg + alpha * feat0_ref[...].astype(jnp.float32)
        proj = jnp.dot(f.astype(jnp.bfloat16), w1_ref[...],
                       preferred_element_type=jnp.float32)
        rst = (1.0 - beta) * f + beta * proj + bias_ref[...]
        out_ref[...] = rst.astype(out_ref.dtype)


def gcnii_forward(adj, feat, feat_0, weight1, bias, *, alpha, beta,
                  block_m=512, block_k=2048):
    """adj[i, j] = 1.0 iff edge j -> i (dense, unweighted); feat/feat_0: (N, D)."""
    N, D = feat.shape
    assert adj.shape == (N, N) and weight1.shape == (D, D) and bias.shape == (D,)

    # ---- host-side (plain XLA) prep -------------------------------------
    # Global symmetric-normalization vector: needs full row sums, computed once.
    degs = jnp.maximum(jnp.sum(adj.astype(jnp.float32), axis=1), 1.0)
    norm = jax.lax.rsqrt(degs)                                    # (N,)

    # Tile geometry: lane-dense feature dim; tk a multiple of tm so the node
    # padding is just round_up(N, tk) (no lcm over-padding of the N x N array).
    d_p = _round_up(D, 128)
    n128 = _round_up(N, 128)
    tk = min(_round_up(block_k, 128), n128)
    tm = min(_round_up(block_m, 128), tk)
    if tk % tm != 0:
        tm = math.gcd(tm, tk)              # both multiples of 128
    n_p = _round_up(N, tk)
    # Keep >= 2 row tiles when cheap so both v7x TensorCores get "parallel" work.
    if n_p // tm < 2 and (n_p // 2) % 128 == 0:
        tm = n_p // 2

    # Adjacency kept as int8 in HBM (0/1 is exact): halves the dominant stream.
    adj_i8 = adj if adj.dtype == jnp.int8 else adj.astype(jnp.int8)
    if n_p != N:
        adj_p = jnp.zeros((n_p, n_p), jnp.int8).at[:N, :N].set(adj_i8)
    else:
        adj_p = adj_i8
    # Pre-scale features by the source-side norm; store bf16.
    feat_src = (feat.astype(jnp.float32) * norm[:, None]).astype(jnp.bfloat16)
    feat_p = jnp.zeros((n_p, d_p), jnp.bfloat16).at[:N, :D].set(feat_src)
    feat0_p = jnp.zeros((n_p, d_p), jnp.bfloat16).at[:N, :D].set(
        feat_0.astype(jnp.bfloat16))
    w1_p = jnp.zeros((d_p, d_p), jnp.bfloat16).at[:D, :D].set(
        weight1.astype(jnp.bfloat16))
    bias_p = jnp.zeros((1, d_p), jnp.float32).at[0, :D].set(
        bias.astype(jnp.float32))
    ndst_p = jnp.ones((n_p, 1), jnp.float32).at[:N, 0].set(norm)

    grid = (n_p // tm, n_p // tk)
    kernel = functools.partial(gcnii_kernel, alpha=float(alpha), beta=float(beta))

    out_dt = feat.dtype
    out_isz = jnp.dtype(out_dt).itemsize

    cost = pl.CostEstimate(
        flops=2 * n_p * n_p * d_p + 2 * n_p * d_p * d_p,
        transcendentals=0,
        bytes_accessed=(n_p * n_p                               # adjacency (int8)
                        + grid[0] * n_p * d_p * 2               # feat per row tile
                        + n_p * d_p * (2 + out_isz)             # feat_0 + output
                        + d_p * d_p * 2),                       # W1
    )

    # Double-buffered VMEM footprint (+ f32 accumulator); cap at 48 MiB so the
    # same config fits v7x's 64 MiB physical VMEM with compiler-scratch headroom.
    vmem_bytes = (2 * (tm * tk                 # adjacency int8
                       + tk * d_p * 2          # normalized features bf16
                       + tm * d_p * 2          # feat_0 bf16
                       + tm * 4 + d_p * 4      # dst norm + bias
                       + d_p * d_p * 2         # W1 bf16
                       + tm * d_p * out_isz)   # output tile
                  + tm * d_p * 4)              # accumulator scratch
    vmem_limit = min(48 * 1024 * 1024,
                     max(32 * 1024 * 1024, int(vmem_bytes * 1.5)))

    out_p = pl.pallas_call(
        kernel,
        out_shape=jax.ShapeDtypeStruct((n_p, d_p), out_dt),
        grid_spec=pltpu.PrefetchScalarGridSpec(
            num_scalar_prefetch=0,
            grid=grid,
            in_specs=[
                pl.BlockSpec((tm, tk), lambda i, k: (i, k)),    # adjacency (int8)
                pl.BlockSpec((tk, d_p), lambda i, k: (k, 0)),   # pre-normed feats
                pl.BlockSpec((tm, 1), lambda i, k: (i, 0)),     # dst-side norm
                pl.BlockSpec((tm, d_p), lambda i, k: (i, 0)),   # initial features
                pl.BlockSpec((d_p, d_p), lambda i, k: (0, 0)),  # W1 (resident)
                pl.BlockSpec((1, d_p), lambda i, k: (0, 0)),    # bias (resident)
            ],
            out_specs=pl.BlockSpec((tm, d_p), lambda i, k: (i, 0)),
            scratch_shapes=[pltpu.VMEM((tm, d_p), jnp.float32)],
        ),
        compiler_params=pltpu.CompilerParams(
            dimension_semantics=("parallel", "arbitrary"),
            vmem_limit_bytes=vmem_limit,
        ),
        cost_estimate=cost,
    )(adj_p, feat_p, ndst_p, feat0_p, w1_p, bias_p)

    return out_p[:N, :D]


def gcnii_reference(adj, feat, feat_0, weight1, bias, *, alpha, beta):
    """Pure-JAX reference mirroring the PyTorch forward.  The kernel streams the
    normalized features / feat_0 / W1 as bf16 (0/1 adjacency is exact in int8),
    with f32 accumulation; the same rounding is applied here so the check can
    stay tight."""
    degs = jnp.maximum(jnp.sum(adj.astype(jnp.float32), axis=1, keepdims=True), 1.0)
    norm = jax.lax.rsqrt(degs)
    h = (feat.astype(jnp.float32) * norm).astype(jnp.bfloat16).astype(jnp.float32)
    agg = jnp.dot(adj.astype(jnp.float32), h,
                  precision=jax.lax.Precision.HIGHEST) * norm
    f = (1.0 - alpha) * agg + alpha * feat_0.astype(jnp.bfloat16).astype(jnp.float32)
    w1 = weight1.astype(jnp.bfloat16).astype(jnp.float32)
    proj = jnp.dot(f.astype(jnp.bfloat16).astype(jnp.float32), w1,
                   precision=jax.lax.Precision.HIGHEST)
    return (1.0 - beta) * f + beta * proj + bias[None, :]


if __name__ == "__main__":
    # Hyperparameters from the module __init__: layer index 2, lambda_=1, alpha=0.1
    in_feats = 32          # D
    num_nodes = 512        # N
    alpha = 0.1
    lambda_ = 1.0
    layer = 2
    beta = math.log(lambda_ / layer + 1.0)

    key = jax.random.PRNGKey(0)
    k_adj, k_feat, k_feat0, k_w1 = jax.random.split(key, 4)

    # Deterministic random graph; self-loops so there are no 0-in-degree nodes
    # (the module raises DGLError otherwise).
    rand_adj = (jax.random.uniform(k_adj, (num_nodes, num_nodes)) < 0.05
                ).astype(jnp.float32)
    adj = jnp.minimum(rand_adj + jnp.eye(num_nodes, dtype=jnp.float32), 1.0)

    feat = jax.random.normal(k_feat, (num_nodes, in_feats), dtype=jnp.float32)
    feat_0 = jax.random.normal(k_feat0, (num_nodes, in_feats), dtype=jnp.float32)

    # Parameters: weight1 ~ normal (nn.init.normal_), bias zeros; weight2 is
    # None because project_initial_features=True.
    weight1 = jax.random.normal(k_w1, (in_feats, in_feats), dtype=jnp.float32)
    bias = jnp.zeros((in_feats,), dtype=jnp.float32)

    ref = gcnii_reference(adj, feat, feat_0, weight1, bias, alpha=alpha, beta=beta)

    # Default (large-tile) config.
    out = gcnii_forward(adj, feat, feat_0, weight1, bias, alpha=alpha, beta=beta)
    out = jax.block_until_ready(out)
    assert out.shape == (num_nodes, in_feats)
    assert jnp.allclose(out, ref, atol=1e-2, rtol=1e-2), "mismatch (default tiles)"

    # Small-tile config: exercises multi-step accumulation along the src axis.
    out_small = gcnii_forward(adj, feat, feat_0, weight1, bias, alpha=alpha,
                              beta=beta, block_m=256, block_k=256)
    out_small = jax.block_until_ready(out_small)
    assert jnp.allclose(out_small, ref, atol=1e-2, rtol=1e-2), "mismatch (small tiles)"

    print("KERNEL_OK")
</pallas_src>

<mosaic_0001>
module attributes {stable_mosaic.version = 11 : i64} {
  func.func @gcnii_kernel(%arg0: i32, %arg1: i32, %arg2: memref<256x512xi8, #tpu.memory_space<vmem>>, %arg3: memref<512x128xbf16, #tpu.memory_space<vmem>>, %arg4: memref<256x1xf32, #tpu.memory_space<vmem>>, %arg5: memref<256x128xbf16, #tpu.memory_space<vmem>>, %arg6: memref<128x128xbf16, #tpu.memory_space<vmem>>, %arg7: memref<1x128xf32, #tpu.memory_space<vmem>>, %arg8: memref<256x128xf32, #tpu.memory_space<vmem>>, %arg9: memref<256x128xf32, #tpu.memory_space<vmem>>) attributes {dimension_semantics = [#tpu.dimension_semantics<parallel>, #tpu.dimension_semantics<arbitrary>], iteration_bounds = array<i64: 2, 1>, scalar_prefetch = 0 : i64, scratch_operands = 1 : i64, tpu.core_type = #tpu.core_type<tc>, window_params = [{transform_indices = @transform_0, window_bounds = array<i64: 256, 512>}, {transform_indices = @transform_1, window_bounds = array<i64: 512, 128>}, {transform_indices = @transform_2, window_bounds = array<i64: 256, 1>}, {transform_indices = @transform_3, window_bounds = array<i64: 256, 128>}, {pipeline_mode = #tpu.pipeline_mode<synchronous>, transform_indices = @transform_4, window_bounds = array<i64: 128, 128>}, {pipeline_mode = #tpu.pipeline_mode<synchronous>, transform_indices = @transform_5, window_bounds = array<i64: 1, 128>}, {transform_indices = @transform_6, window_bounds = array<i64: 256, 128>}]} {
    %c0_i32 = arith.constant 0 : i32
    %0 = arith.cmpi eq, %arg1, %c0_i32 : i32
    %1 = arith.extui %0 : i1 to i32
    %c0_i32_0 = arith.constant 0 : i32
    %2 = arith.cmpi ne, %1, %c0_i32_0 : i32
    scf.if %2 {
      %cst_10 = arith.constant 0.000000e+00 : f32
      %13 = vector.broadcast %cst_10 : f32 to vector<256x128xf32>
      %c0_11 = arith.constant 0 : index
      %c0_12 = arith.constant 0 : index
      %14 = vector.load %arg9[%c0_11, %c0_12] : memref<256x128xf32, #tpu.memory_space<vmem>>, vector<256x128xf32>
      tpu.vector_store %arg9[%c0_11, %c0_12], %13 {strides = array<i32>} : memref<256x128xf32, #tpu.memory_space<vmem>>, vector<256x128xf32>,
    } else {
    }
    %c0 = arith.constant 0 : index
    %c0_1 = arith.constant 0 : index
    %3 = vector.load %arg9[%c0, %c0_1] : memref<256x128xf32, #tpu.memory_space<vmem>>, vector<256x128xf32>
    %c0_2 = arith.constant 0 : index
    %c0_3 = arith.constant 0 : index
    %4 = vector.load %arg2[%c0_2, %c0_3] : memref<256x512xi8, #tpu.memory_space<vmem>>, vector<256x512xi8>
    %5 = arith.sitofp %4 : vector<256x512xi8> to vector<256x512xbf16>
    %c0_4 = arith.constant 0 : index
    %c0_5 = arith.constant 0 : index
    %6 = vector.load %arg3[%c0_4, %c0_5] : memref<512x128xbf16, #tpu.memory_space<vmem>>, vector<512x128xbf16>
    %cst = arith.constant dense<0.000000e+00> : vector<256x128xf32>
    %7 = tpu.matmul %5, %6, %cst {dimension_numbers = #tpu.dot_dimension_numbers<[1], [0], [0], [1], [0, 0, 1, 1], [], []>} : vector<256x512xbf16>, vector<512x128xbf16>, vector<256x128xf32> -> vector<256x128xf32>
    %8 = arith.addf %3, %7 : vector<256x128xf32>
    %c0_6 = arith.constant 0 : index
    %c0_7 = arith.constant 0 : index
    %9 = vector.load %arg9[%c0_6, %c0_7] : memref<256x128xf32, #tpu.memory_space<vmem>>, vector<256x128xf32>
    tpu.vector_store %arg9[%c0_6, %c0_7], %8 {strides = array<i32>} : memref<256x128xf32, #tpu.memory_space<vmem>>, vector<256x128xf32>,
    %c0_i32_8 = arith.constant 0 : i32
    %10 = arith.cmpi eq, %arg1, %c0_i32_8 : i32
    %11 = arith.extui %10 : i1 to i32
    %c0_i32_9 = arith.constant 0 : i32
    %12 = arith.cmpi ne, %11, %c0_i32_9 : i32
    scf.if %12 {
      %c0_10 = arith.constant 0 : index
      %c0_11 = arith.constant 0 : index
      %13 = vector.load %arg9[%c0_10, %c0_11] : memref<256x128xf32, #tpu.memory_space<vmem>>, vector<256x128xf32>
      %c0_12 = arith.constant 0 : index
      %c0_13 = arith.constant 0 : index
      %14 = vector.load %arg4[%c0_12, %c0_13] : memref<256x1xf32, #tpu.memory_space<vmem>>, vector<256x1xf32>
      %15 = vector.broadcast %14 : vector<256x1xf32> to vector<256x128xf32>
      %16 = arith.mulf %13, %15 : vector<256x128xf32>
      %cst_14 = arith.constant 0.899999976 : f32
      %17 = vector.broadcast %cst_14 : f32 to vector<256x128xf32>
      %18 = arith.mulf %17, %16 : vector<256x128xf32>
      %c0_15 = arith.constant 0 : index
      %c0_16 = arith.constant 0 : index
      %19 = vector.load %arg5[%c0_15, %c0_16] : memref<256x128xbf16, #tpu.memory_space<vmem>>, vector<256x128xbf16>
      %20 = arith.extf %19 : vector<256x128xbf16> to vector<256x128xf32>
      %cst_17 = arith.constant 1.000000e-01 : f32
      %21 = vector.broadcast %cst_17 : f32 to vector<256x128xf32>
      %22 = arith.mulf %21, %20 : vector<256x128xf32>
      %23 = arith.addf %18, %22 : vector<256x128xf32>
      %24 = arith.truncf %23 : vector<256x128xf32> to vector<256x128xbf16>
      %c0_18 = arith.constant 0 : index
      %c0_19 = arith.constant 0 : index
      %25 = vector.load %arg6[%c0_18, %c0_19] : memref<128x128xbf16, #tpu.memory_space<vmem>>, vector<128x128xbf16>
      %cst_20 = arith.constant dense<0.000000e+00> : vector<256x128xf32>
      %26 = tpu.matmul %24, %25, %cst_20 {dimension_numbers = #tpu.dot_dimension_numbers<[1], [0], [0], [1], [0, 0, 1, 1], [], []>} : vector<256x128xbf16>, vector<128x128xbf16>, vector<256x128xf32> -> vector<256x128xf32>
      %cst_21 = arith.constant 0.594534874 : f32
      %27 = vector.broadcast %cst_21 : f32 to vector<256x128xf32>
      %28 = arith.mulf %27, %23 : vector<256x128xf32>
      %cst_22 = arith.constant 0.405465096 : f32
      %29 = vector.broadcast %cst_22 : f32 to vector<256x128xf32>
      %30 = arith.mulf %29, %26 : vector<256x128xf32>
      %31 = arith.addf %28, %30 : vector<256x128xf32>
      %c0_23 = arith.constant 0 : index
      %c0_24 = arith.constant 0 : index
      %32 = vector.load %arg7[%c0_23, %c0_24] : memref<1x128xf32, #tpu.memory_space<vmem>>, vector<1x128xf32>
      %33 = vector.broadcast %32 : vector<1x128xf32> to vector<256x128xf32>
      %34 = arith.addf %31, %33 : vector<256x128xf32>
      %c0_25 = arith.constant 0 : index
      %c0_26 = arith.constant 0 : index
      %35 = vector.load %arg8[%c0_25, %c0_26] : memref<256x128xf32, #tpu.memory_space<vmem>>, vector<256x128xf32>
      tpu.vector_store %arg8[%c0_25, %c0_26], %34 {strides = array<i32>} : memref<256x128xf32, #tpu.memory_space<vmem>>, vector<256x128xf32>,
    } else {
    }
    return
  }
  func.func @transform_0(%arg0: i32, %arg1: i32) -> (i32, i32) {
    %c0_i32 = arith.constant 0 : i32
    return %arg0, %arg1 : i32, i32
  }
  func.func @transform_1(%arg0: i32, %arg1: i32) -> (i32, i32) {
    %c0_i32 = arith.constant 0 : i32
    %c0_i32_0 = arith.constant 0 : i32
    return %arg1, %c0_i32 : i32, i32
  }
  func.func @transform_2(%arg0: i32, %arg1: i32) -> (i32, i32) {
    %c0_i32 = arith.constant 0 : i32
    %c0_i32_0 = arith.constant 0 : i32
    return %arg0, %c0_i32 : i32, i32
  }
  func.func @transform_3(%arg0: i32, %arg1: i32) -> (i32, i32) {
    %c0_i32 = arith.constant 0 : i32
    %c0_i32_0 = arith.constant 0 : i32
    return %arg0, %c0_i32 : i32, i32
  }
  func.func @transform_4(%arg0: i32, %arg1: i32) -> (i32, i32) {
    %c0_i32 = arith.constant 0 : i32
    %c0_i32_0 = arith.constant 0 : i32
    %c0_i32_1 = arith.constant 0 : i32
    return %c0_i32, %c0_i32_0 : i32, i32
  }
  func.func @transform_5(%arg0: i32, %arg1: i32) -> (i32, i32) {
    %c0_i32 = arith.constant 0 : i32
    %c0_i32_0 = arith.constant 0 : i32
    %c0_i32_1 = arith.constant 0 : i32
    return %c0_i32, %c0_i32_0 : i32, i32
  }
  func.func @transform_6(%arg0: i32, %arg1: i32) -> (i32, i32) {
    %c0_i32 = arith.constant 0 : i32
    %c0_i32_0 = arith.constant 0 : i32
    return %arg0, %c0_i32 : i32, i32
  }
}

</mosaic_0001>

<bundles_post_ra>
// kernel: tpu_custom_call.1
= control target key start
LH: loop header
LB: loop body
LE: loop exit
PB: predicated region body
PF: predicated region fallthrough
CT: control target
= control target key end

     0   :  { %s3582_s0 = inlined_call_operand.vmem [shape: s8[512,512], index: 0, kind: input, shape index: {}]   ;;  %s3583_s1 = inlined_call_operand.hbm [shape: bf16[512,128], index: 1, kind: input, shape index: {}]   ;;  %s3584_s2 = inlined_call_operand.vmem [shape: f32[512,1], index: 2, kind: input, shape index: {}]   ;;  %s3585_s3 = inlined_call_operand.hbm [shape: bf16[512,128], index: 3, kind: input, shape index: {}]   ;;  %s3586_s4 = inlined_call_operand.hbm [shape: bf16[128,128], index: 4, kind: input, shape index: {}]   ;;  %s3587_s5 = inlined_call_operand.vmem [shape: f32[1,128], index: 5, kind: input, shape index: {}]   ;;  %s3588_s6 = inlined_call_operand.hbm [shape: f32[512,128], index: 6, kind: output, shape index: {}]  }
   0x1   :  { %3597 = sst [smem:[#allocation17_spill]] %s3583_s1 }
   0x2   :  { %3598 = sst [smem:[#allocation18_spill]] %s3586_s4 }
   0x3   :  { %11 = vsyncpa [#allocation4], 0 }
   0x4   :  { %12 = vsyncpa [#allocation7], 0 }
   0x5   :  { %14 = vsyncpa [#allocation7 + $0x1], 0 }
   0x6   :  { %15 = vsyncpa [#allocation5], 0 }
   0x7   :  { %17 = vsyncpa [#allocation5 + $0x1], 0  ;;  %s2970_s21 = smov 0   ;;  %s2972_s22 = smov 0  }
   0x8   :  { %s2974_s23 = smov 0   ;;  %s2976_s24 = smov 0  }
   0x9   :  { %s2978_s25 = smov 0   ;;  %s2980_s26 = smov 0  }
   0xa LB: > { %3599 = sst [smem:[#allocation14_spill]] %s2904_s21  ;;  %s3001_s27 = sadd.s32 4294967295, %s2924_s26   ;;  %s2924_s26 = sphi %s2980_s26, %s23_s26   ;;  %s2920_s25 = sphi %s2978_s25, %s3627_s25   ;;  %s2916_s24 = sphi %s2976_s24, %s3626_s24   ;;  %s2912_s23 = sphi %s2974_s23, %s3625_s23   ;;  %s2908_s22 = sphi %s2972_s22, %s3624_s22   ;;  %s2904_s21 = sphi %s2970_s21, %s3623_s21  }
   0xb   : > { %3600 = sst [smem:[#allocation15_spill]] %s2924_s26  ;;  %s2168_s28 = sadd.s32 4294967294, %s2924_s26  }
   0xc   : > { %p129_p0 = scmp.ne.s32.totalorder %s2912_s23, %s2908_s22  ;;  %p130_p1 = scmp.eq.s32.totalorder %s2924_s26, 0 }
   0xd   : > { %p135_p2 = scmp.ne.s32.totalorder %s2908_s22, %s2904_s21  ;;  %p3589_p3 = scmp.eq.s32.totalorder %s3001_s27, 0 }
   0xe   : > { %p3010_p4 = por %p130_p1, %p129_p0  ;;  %p201_p5 = scmp.eq.s32.totalorder %s3001_s27, 1 }
   0xf   : > { %p3017_p6 = por %p3589_p3, %p135_p2  ;;  %p207_p7 = scmp.eq.s32.totalorder %s2168_s28, 1 }
  0x10   : > { %p3021_p8 = por %p201_p5, %p129_p0  ;;  %p2169_p9 = scmp.ge.s32.totalorder %s2924_s26, 1 }
  0x11   : > { %p3026_p10 = por %p207_p7, %p135_p2  ;;  %p214_p11 = scmp.lt.s32.totalorder %s2924_s26, 3 }
  0x12   : > { %s3603_s7 = scalar_select %p3021_p8, 1, 0 }
  0x13   : > { %s3604_s8 = scalar_select %p3026_p10, 1, 0 }
  0x14   : > { %p3031_p12 = pnand %p2169_p9, %p214_p11  ;;  %s2926_s10 = smov [#allocation8]  }
  0x15   : > { %3605 = sst [smem:[#allocation16_spill]] %s3604_s8  ;;  %s242_s11 = sshll.u32 %s2926_s10, 4  ;;  %s243_s11 = int_to_ptr.vmem [resolvable:$true] %s242_s11 }
  0x16   : > { %p2638_p1 = pneg %p3031_p12  ;;  %p2655_p0 = scmp.lt.s32.totalorder %s2924_s26, 2 }
  0x17   : > { %s2767_s14 = scalar_lea.vmem %s243_s11, 1024  ;;  %p2775_p10 = scmp.lt.s32.totalorder %s243_s11, %s243_s11 }
  0x18   : > { %p3041_p5 = pnand %p2638_p1, %p3589_p3  ;;  %p3047_p2 = pnand %p2655_p0, %p3010_p4 }
  0x19   : > { %p2768_p9 = scmp.ne.s32.totalorder %s243_s11, %s2767_s14  ;;  %p2776_p1 = scmp.lt.s32.totalorder %s2767_s14, %s2767_s14 }
  0x1a   : > { %p2758_p7 = pneg %p3041_p5 }
  0x1b   : > { %p2777_p3 = por %p2776_p1, %p2775_p10 }
  0x1c   : > { %p2770_p11 = pnand %p2768_p9, %p2758_p7 }
  0x1e   : > { %p2771_p13 = pneg %p2770_p11 }
  0x20   : > { %p2778_p8 = pnand %p2777_p3, %p2771_p13 }
  0x22   : > { %2781 = shalt.err (!%p2778_p8)
}
  0x23   : > { %s3593_s15 = smov 64   ;;  %s3594_s16 = smov 4  }
  0x24   : > { %s3609_s4 = sld [smem:[#allocation18_spill]]  ;;  %s2929_s19 = smov [#allocation3]  }
  0x25   : > { %s229_s20 = sshll.u32 %s2929_s19, 4  ;;  %s230_s20 = int_to_ptr.vmem [resolvable:$true] %s229_s20 }
  0x26   : > { %s2793_s28 = scalar_lea.vmem %s230_s20, 4096  ;;  %p2801_p10 = scmp.lt.s32.totalorder %s230_s20, %s230_s20 }
  0x27   : > { %p2794_p4 = scmp.ne.s32.totalorder %s230_s20, %s2793_s28  ;;  %p2802_p13 = scmp.lt.s32.totalorder %s2793_s28, %s2793_s28 }
  0x29   : > { %p2796_p3 = pnand %p2794_p4, %p2758_p7  ;;  %p2803_p0 = por %p2802_p13, %p2801_p10 }
  0x2a   : > { %2644 = dma.hbm_to_vmem [thread:$0]  (!%p3041_p5), %s3609_s4, 1024, %s243_s11, [#allocation7], %s3593_s15, %s3593_s15, %s3594_s16  }
  0x2b   : > { %p2797_p8 = pneg %p2796_p3 }
  0x2d   : > { %p2804_p9 = pnand %p2803_p0, %p2797_p8 }
  0x2f   : > { %2807 = shalt.err (!%p2804_p9)
}
  0x30   : > { %s3610_s1 = sld [smem:[#allocation17_spill]]  ;;  %s122_s11 = sadd.s32 1, %s2912_s23 }
  0x31   : > { %s35_s14 = sadd.s32 1, %s2920_s25  ;;  %s283_s17 = sand.u32 1, %s2924_s26  }
  0x32   : > { %p37_p7 = scmp.ge.s32.totalorder %s35_s14, 2  ;;  %s285_s12 = sand.u32 1, %s2912_s23  }
  0x33   : > { %s2232_s18 = sshll.u32 %s2920_s25, 11  ;;  %s2173_s19 = sshll.u32 %s285_s12, 7 }
  0x34   : > { %s3629_s14 = smov (%p37_p7, %s35_s14), 0  ;;  %s293_s10 = scalar_lea.hbm %s3585_s3, %s2232_s18 }
  0x35   : > { %s119_s4 = ssub.s32 %s2920_s25, %s3629_s14  ;;  %s287_s8 = scalar_lea.vmem [#allocation6], %s2173_s19 }
  0x36   : > { %2641 = dma.hbm_to_vmem [thread:$0]  (!%p3041_p5), %s3610_s1, 4096, %s230_s20, [#allocation4], %s3593_s15, %s3593_s15, %s3594_s16  }
  0x37   : > { %p120_p11 = scmp.eq.s32.totalorder %s119_s4, 0  ;;  %s294_s21 = sshll.u32 %s287_s8, 4  ;;  %s295_s21 = int_to_ptr.vmem [resolvable:$true] %s294_s21 }
  0x38   : > { %s284_s15 = scalar_lea.sflag [#allocation7], %s283_s17  ;;  %p2810_p5 = pneg %p3047_p2 }
  0x39   : > { %s3088_s20 = scalar_select %p120_p11, %s2912_s23, %s122_s11  }
  0x3a   : > { %s2821_s16 = scalar_lea.vmem %s295_s21, 2048  ;;  %s2930_s1 = smov [#allocation6]  }
  0x3b   : > { %p2822_p1 = scmp.ne.s32.totalorder %s295_s21, %s2821_s16  ;;  %s2826_s12 = sshll.u32 %s2930_s1, 4  ;;  %s2827_s12 = int_to_ptr.vmem [resolvable:$false] %s2826_s12 }
  0x3c   : > { %s2828_s26 = scalar_lea.vmem %s2827_s12, 4096  ;;  %p2829_p8 = scmp.lt.s32.totalorder %s295_s21, %s2827_s12 }
  0x3d   : > { %p2824_p4 = pnand %p2822_p1, %p2810_p5  ;;  %p2830_p10 = scmp.lt.s32.totalorder %s2828_s26, %s2821_s16 }
  0x3f   : > { %p2825_p3 = pneg %p2824_p4  ;;  %p2831_p13 = por %p2830_p10, %p2829_p8 }
  0x41   : > { %p2832_p0 = pnand %p2831_p13, %p2825_p3 }
  0x43   : > { %2835 = shalt.err (!%p2832_p0)
}
  0x44   : > { %s3611_s4 = smov 4   ;;  %s3612_s8 = smov 64  }
  0x45   : > { %2648 = dma.hbm_to_vmem [thread:$0]  (!%p3047_p2), %s293_s10, 2048, %s295_s21, %s284_s15, %s3612_s8, %s3612_s8, %s3611_s4  }
  0x46   : > { %306 = sbr.rel (%p3031_p12) target bundleno = 698 (0x2ba), region = 44  ;;  %p3613_p9 = scmp.eq.s32.totalorder (!%p3031_p12), %s3001_s27, 0 }
  0x4b   : > { %2887 = dma.done.wait (%p3613_p9), [#allocation4], 4096   ;;  %p3614_p7 = pmov %p3613_p9 }
  0x4c   : > { %s312_s1 = sand.u32 1, %s3001_s27   ;;  %s3105_s26 = sand.u32 1, %s2908_s22  }
  0x4d   : > { %2889 = vsyncadd (%p3614_p7), [#allocation4], 4294963200  ;;  %s2178_s13 = sshll.u32 %s3105_s26, 7  ;;  %s313_s16 = scalar_lea.sflag [#allocation7], %s312_s1 }
  0x4e   : > { %s3108_s11 = scalar_lea.vmem [#allocation6], %s2178_s13 }
  0x4f   : > { %2891 = dma.done.wait (%p3017_p6), %s313_s16, 2048  }
  0x50   : > { %2893 = vsyncadd (%p3017_p6), %s313_s16, 4294965248  ;;  %p3615_p12 = pmov %p3614_p7 }
  0x51   : > { %p3616_p2 = pmov %p3614_p7 }
  0x52   : > { %2895 = dma.done.wait (%p3615_p12), [#allocation7], 1024  }
  0x53   : > { %2897 = vsyncadd (%p3616_p2), [#allocation7], 4294966272  ;;  %s2181_s21 = sshll.u32 %s2916_s24, 3  ;;  %v2716_v0 = vld [vmem:[#allocation3 + $0x78] sm:$0xff]   ;;  %v2718_v2 = vld [vmem:[#allocation3 + $0x70] sm:$0xff]   ;;  %v2931_v9 = vmov 0  }
  0x54   : > { %v2717_v1 = vld [vmem:[#allocation3 + $0x38] sm:$0xff]   ;;  %2610 = vmatprep.subr.bf16.mxu1 %v2716_v0  ;;  %p366_p11 = scmp.lt.s32.totalorder %s2181_s21, 15  ;;  %2314 = vmatprep.subr.bf16.mxu0 %v2716_v0  ;;  %v2719_v3 = vld [vmem:[#allocation3 + $0x30] sm:$0xff]   ;;  %v2720_v4 = vld [vmem:[#allocation3 + $0x68] sm:$0xff]   ;;  %s2184_s17 = sshll.u32 %s2916_s24, 5 }
  0x55   : > { %2618 = vmatpush3.bf16.msra.mxu1 %v2717_v1  ;;  %2315 = vmatpush3.bf16.msra.mxu0 %v2717_v1  ;;  %v2721_v5 = vld [vmem:[#allocation3 + $0x28] sm:$0xff]   ;;  %v2722_v6 = vld [vmem:[#allocation3 + $0x60] sm:$0xff]   ;;  %v2724_v8 = vld [vmem:[#allocation3 + $0x58] sm:$0xff]   ;;  %p378_p6 = scmp.lt.s32.totalorder %s2184_s17, 63  ;;  %s2180_s10 = sshll.u32 %s3105_s26, 8 }
  0x56   : > { %2611 = vmatprep.subr.bf16.mxu1 %v2718_v2  ;;  %2316 = vmatprep.subr.bf16.mxu0 %v2718_v2  ;;  %s3631_s21 = smov (!%p366_p11, %s2181_s21), 15  ;;  %v2723_v7 = vld [vmem:[#allocation3 + $0x20] sm:$0xff]   ;;  %v2725_v10 = vld [vmem:[#allocation3 + $0x18] sm:$0xff]   ;;  %v2726_v11 = vld [vmem:[#allocation3 + $0x50] sm:$0xff]   ;;  %s3433_s8 = scalar_lea.vmem [#allocation9], %s2180_s10 }
  0x57   : > { %s2233_s27 = sshll.u32 %s3631_s21, 5  ;;  %2714 = vset.pattern.permute.xlu0 %v2931_v9  ;;  %2715 = vset.pattern.permute.xlu1 %v2931_v9  ;;  %v2727_v14 = vld [vmem:[#allocation3 + $0x10] sm:$0xff]   ;;  %v2728_v15 = vld [vmem:[#allocation3 + $0x48] sm:$0xff]   ;;  %v2730_v17 = vld [vmem:[#allocation3 + $0x40] sm:$0xff]   ;;  %s3633_s17 = smov (!%p378_p6, %s2184_s17), 63 }
  0x58   : > { %s3122_s15 = scalar_lea.vmem %s3582_s0, %s2233_s27  ;;  %v2729_v16 = vld [vmem:[#allocation3 + $0x8] sm:$0xff]   ;;  %v2731_v18 = vld [vmem:[#allocation3] sm:$0xff]   ;;  %v2732_v20 = vld [vmem:[#allocation3 + $0xf8] sm:$0xff]   ;;  %s2185_s18 = sshll.u32 %s3633_s17, 3 }
  0x59   : > { %2619 = vmatpush3.bf16.msra.mxu1 %v2719_v3  ;;  %2317 = vmatpush3.bf16.msra.mxu0 %v2719_v3  ;;  %v479_v12 = vld [vmem:[%s3122_s15 + $0xc8] sm:$0xff]  ;;  %v478_v19 = vld [vmem:[%s3122_s15 + $0xc0] sm:$0xff]  ;;  %v2733_v23 = vld [vmem:[#allocation3 + $0xb8] sm:$0xff]   ;;  %s3133_s29 = scalar_lea.vmem %s3584_s2, %s2185_s18  ;;  %s2234_s1 = sshll.u32 %s2916_s24, 12 }
  0x5a   : > { %2612 = vmatprep.subr.bf16.mxu1 %v2720_v4  ;;  %2318 = vmatprep.subr.bf16.mxu0 %v2720_v4  ;;  %v535_v13 = vunpack.c.l.s8.bf16 %v479_v12  ;;  %v534_v21 = vunpack.c.l.s8.bf16 %v478_v19  ;;  %v539_v22 = vunpack.c.h.s8.bf16 %v479_v12  ;;  %v2734_v24 = vld [vmem:[#allocation3 + $0xf0] sm:$0xff]   ;;  %v455_v25 = vld [vmem:[%s3122_s15 + $0x8] sm:$0xff]  ;;  %v454_v28 = vld [vmem:[%s3122_s15] sm:$0xff]  ;;  %v538_v33 = vunpack.c.h.s8.bf16 %v478_v19  ;;  %s2033_s13 = sshll.u32 %s3433_s8, 4  ;;  %s3529_s21 = scalar_lea.hbm %s3588_s6, %s2234_s1  ;;  %s3531_s13 = int_to_ptr.vmem [resolvable:$true] %s2033_s13 }
  0x5b   : > { %v487_v26 = vunpack.c.l.s8.bf16 %v455_v25  ;;  %v491_v27 = vunpack.c.h.s8.bf16 %v455_v25  ;;  %v2735_v29 = vld [vmem:[#allocation3 + $0xb0] sm:$0xff]   ;;  %v486_v30 = vunpack.c.l.s8.bf16 %v454_v28  ;;  %v2736_v31 = vld [vmem:[#allocation3 + $0xe8] sm:$0xff]   ;;  %v2738_v37 = vld [vmem:[#allocation3 + $0xe0] sm:$0xff]   ;;  %v490_v39 = vunpack.c.h.s8.bf16 %v454_v28  ;;  %s2020_s24 = scalar_lea.sflag [#allocation5], %s3105_s26  ;;  %s2836_s27 = scalar_lea.vmem %s3531_s13, 4096 }
  0x5c   : > { %934 = vmatprep.mubr.bf16.mxu1 %v535_v13  ;;  %v483_v32 = vld [vmem:[%s3122_s15 + $0xe8] sm:$0xff]  ;;  %v1227_v38 = vld [vmem:[%s3133_s29] sm:$0xff]  ;;  %v1229_v40 = vld [vmem:[%s3133_s29 + $0x10] sm:$0xff]  ;;  %p2837_p5 = scmp.ne.s32.totalorder %s3531_s13, %s2836_s27  ;;  %p3617_p1 = scmp.ne.s32.totalorder %s3603_s7, 0 }
  0x5d   : > { %2620 = vmatpush3.bf16.msra.mxu1 %v2721_v5  ;;  %2319 = vmatpush3.bf16.msra.mxu0 %v2721_v5  ;;  %v2737_v34 = vld [vmem:[#allocation3 + $0xa8] sm:$0xff]   ;;  %v543_v35 = vunpack.c.l.s8.bf16 %v483_v32  ;;  %v2739_v43 = vld [vmem:[#allocation3 + $0xa0] sm:$0xff]   ;;  %v1230_v45 = vld [vmem:[%s3133_s29 + $0x18] sm:$0xff]  ;;  %v547_v51 = vunpack.c.h.s8.bf16 %v483_v32  ;;  %s2932_s30 = smov [#allocation9]  }
  0x5e   : > { %2613 = vmatprep.subr.bf16.mxu1 %v2722_v6  ;;  %2320 = vmatprep.subr.bf16.mxu0 %v2722_v6  ;;  %v459_v36 = vld [vmem:[%s3122_s15 + $0x28] sm:$0xff]  ;;  %v482_v44 = vld [vmem:[%s3122_s15 + $0xe0] sm:$0xff]  ;;  %v2740_v46 = vld [vmem:[#allocation3 + $0xd8] sm:$0xff]   ;;  %p2838_p4 = pnand %p2837_p5, %p3617_p1  ;;  %s2840_s9 = sshll.u32 %s2932_s30, 4  ;;  %s2841_s9 = int_to_ptr.vmem [resolvable:$false] %s2840_s9 }
  0x5f   : > { %838 = vmatprep.mubr.bf16.mxu0 %v487_v26  ;;  %1261 = vperm.xlu0 %2714, %v1227_v38   ;;  %v495_v41 = vunpack.c.l.s8.bf16 %v459_v36  ;;  %v1228_v42 = vld [vmem:[%s3133_s29 + $0x8] sm:$0xff]  ;;  %v542_v47 = vunpack.c.l.s8.bf16 %v482_v44  ;;  %v458_v48 = vld [vmem:[%s3122_s15 + $0x20] sm:$0xff]  ;;  %v2741_v50 = vld [vmem:[#allocation3 + $0x98] sm:$0xff]   ;;  %v499_v58 = vunpack.c.h.s8.bf16 %v459_v36  ;;  %v546_v63 = vunpack.c.h.s8.bf16 %v482_v44  ;;  %p2843_p8 = scmp.lt.s32.totalorder %s3531_s13, %s2841_s9 }
  0x60   : > { %1271 = vperm.xlu1 %2715, %v1229_v40   ;;  %v1231_v49 = vld [vmem:[%s3133_s29 + $0x20] sm:$0xff]  ;;  %v1232_v52 = vld [vmem:[%s3133_s29 + $0x28] sm:$0xff]  ;;  %v2742_v53 = vld [vmem:[#allocation3 + $0xd0] sm:$0xff]   ;;  %v494_v55 = vunpack.c.l.s8.bf16 %v458_v48  ;;  %v498_v4 = vunpack.c.h.s8.bf16 %v458_v48  ;;  %p2839_p3 = pneg %p2838_p4 }
  0x61   : > { %2621 = vmatpush3.bf16.msra.mxu1 %v2723_v7  ;;  %2321 = vmatpush3.bf16.msra.mxu0 %v2723_v7  ;;  %v2743_v54 = vld [vmem:[#allocation3 + $0x90] sm:$0xff]   ;;  %v2744_v56 = vld [vmem:[#allocation3 + $0xc8] sm:$0xff]   ;;  %v457_v57 = vld [vmem:[%s3122_s15 + $0x18] sm:$0xff] }
  0x62   : > { %2614 = vmatprep.subr.bf16.mxu1 %v2724_v8  ;;  %2322 = vmatprep.subr.bf16.mxu0 %v2724_v8  ;;  %v1233_v59 = vld [vmem:[%s3133_s29 + $0x30] sm:$0xff]  ;;  %v1234_v60 = vld [vmem:[%s3133_s29 + $0x38] sm:$0xff]  ;;  %v1235_v61 = vld [vmem:[%s3133_s29 + $0x40] sm:$0xff]  ;;  %v489_v0 = vunpack.c.l.s8.bf16 %v457_v57  ;;  %v493_v13 = vunpack.c.h.s8.bf16 %v457_v57 }
  0x63   : > { %1266 = vperm.xlu0 %2714, %v1228_v42   ;;  %v2745_v62 = vld [vmem:[#allocation3 + $0x88] sm:$0xff]   ;;  %v2746_v3 = vld [vmem:[#allocation3 + $0xc0] sm:$0xff]   ;;  %v1237_v6 = vld [vmem:[%s3133_s29 + $0x50] sm:$0xff] }
  0x64   : > { %1276 = vperm.xlu1 %2715, %v1230_v45   ;;  %v463_v1 = vld [vmem:[%s3122_s15 + $0x48] sm:$0xff]  ;;  %v2747_v7 = vld [vmem:[#allocation3 + $0x80] sm:$0xff]   ;;  %v456_v8 = vld [vmem:[%s3122_s15 + $0x10] sm:$0xff] }
  0x65   : > { %2622 = vmatpush3.bf16.msra.mxu1 %v2725_v10  ;;  %2323 = vmatpush3.bf16.msra.mxu0 %v2725_v10  ;;  %v1236_v2 = vld [vmem:[%s3133_s29 + $0x48] sm:$0xff]  ;;  %v503_v5 = vunpack.c.l.s8.bf16 %v463_v1  ;;  %v1238_v9 = vld [vmem:[%s3133_s29 + $0x58] sm:$0xff]  ;;  %v488_v10 = vunpack.c.l.s8.bf16 %v456_v8  ;;  %v1239_v12 = vld [vmem:[%s3133_s29 + $0x60] sm:$0xff] }
  0x66   : > { %2615 = vmatprep.subr.bf16.mxu1 %v2726_v11  ;;  %2324 = vmatprep.subr.bf16.mxu0 %v2726_v11  ;;  %v462_v11 = vld [vmem:[%s3122_s15 + $0x40] sm:$0xff]  ;;  %v461_v19 = vld [vmem:[%s3122_s15 + $0x38] sm:$0xff]  ;;  %v460_v28 = vld [vmem:[%s3122_s15 + $0x30] sm:$0xff] }
  0x67   : > { %1281 = vperm.xlu0 %2714, %v1231_v49   ;;  %v506_v25 = vunpack.c.h.s8.bf16 %v462_v11  ;;  %v1247_v32 = vld [vmem:[%s3133_s29 + $0xa0] sm:$0xff]  ;;  %v1250_v38 = vld [vmem:[%s3133_s29 + $0xb8] sm:$0xff]  ;;  %v500_v40 = vunpack.c.h.s8.bf16 %v460_v28  ;;  %v1252_v44 = vld [vmem:[%s3133_s29 + $0xc8] sm:$0xff] }
  0x68   : > { %1286 = vperm.xlu1 %2715, %v1232_v52   ;;  %v464_v48 = vld [vmem:[%s3122_s15 + $0x50] sm:$0xff]  ;;  %v1254_v49 = vld [vmem:[%s3133_s29 + $0xd8] sm:$0xff]  ;;  %v1255_v52 = vld [vmem:[%s3133_s29 + $0xe0] sm:$0xff] }
  0x69   : > { %2623 = vmatpush3.bf16.msra.mxu1 %v2727_v14  ;;  %2325 = vmatpush3.bf16.msra.mxu0 %v2727_v14  ;;  %v1240_v14 = vld [vmem:[%s3133_s29 + $0x68] sm:$0xff]  ;;  %v1257_v57 = vld [vmem:[%s3133_s29 + $0xf0] sm:$0xff] }
  0x6a   : > { %2616 = vmatprep.subr.bf16.mxu1 %v2728_v15  ;;  %2326 = vmatprep.subr.bf16.mxu0 %v2728_v15  ;;  %v502_v15 = vunpack.c.l.s8.bf16 %v462_v11 }
  0x6b   : > { %1291 = vperm.xlu0 %2714, %v1233_v59   ;;  %v469_v59 = vld [vmem:[%s3122_s15 + $0x78] sm:$0xff] }
  0x6c   : > { %1296 = vperm.xlu1 %2715, %v1234_v60   ;;  %v508_v60 = vunpack.c.h.s8.bf16 %v464_v48 }
  0x6d   : > { %2624 = vmatpush3.bf16.msra.mxu1 %v2729_v16  ;;  %2327 = vmatpush3.bf16.msra.mxu0 %v2729_v16  ;;  %v507_v16 = vunpack.c.h.s8.bf16 %v463_v1  ;;  %v468_v1 = vld [vmem:[%s3122_s15 + $0x70] sm:$0xff] }
  0x6e   : > { %2617 = vmatprep.subr.bf16.mxu1 %v2730_v17  ;;  %2328 = vmatprep.subr.bf16.mxu0 %v2730_v17  ;;  %v1241_v17 = vld [vmem:[%s3133_s29 + $0x70] sm:$0xff] }
  0x6f   : > { %1301 = vperm.xlu0 %2714, %v1235_v61   ;;  %v513_v61 = vunpack.c.l.s8.bf16 %v469_v59 }
  0x70   : > { %1306 = vperm.xlu1 %2715, %v1236_v2   ;;  %v512_v2 = vunpack.c.l.s8.bf16 %v468_v1 }
  0x71   : > { %2625 = vmatpush3.bf16.msra.mxu1 %v2731_v18  ;;  %2329 = vmatpush3.bf16.msra.mxu0 %v2731_v18  ;;  %v1242_v18 = vld [vmem:[%s3133_s29 + $0x78] sm:$0xff] }
  0x72   : > { %2426 = vmatprep.subr.bf16.mxu1 %v2732_v20  ;;  %v492_v20 = vunpack.c.h.s8.bf16 %v456_v8  ;;  %v2748_v8 = vld [vmem:[#allocation8 + $0x38] sm:$0xff]  }
  0x73   : > { %1311 = vperm.xlu0 %2714, %v1237_v6   ;;  %2562 = vmatprep.subr.bf16.mxu0 %v2748_v8 }
  0x74   : > { %935 = vmatmul.mubr.bf16.vlgmr.msra.gmra.mxu1 %v534_v21  ;;  %839 = vmatmul.mubr.bf16.vlgmr.msra.gmra.mxu0 %v486_v30  ;;  %v1243_v21 = vld [vmem:[%s3133_s29 + $0x80] sm:$0xff]  ;;  %v496_v30 = vunpack.c.l.s8.bf16 %v460_v28 }
  0x75   : > { %2427 = vmatpush3.bf16.msra.mxu1 %v2733_v23  ;;  %942 = vmatprep.mubr.bf16.mxu1 %v539_v22  ;;  %v497_v22 = vunpack.c.l.s8.bf16 %v461_v19  ;;  %v467_v23 = vld [vmem:[%s3122_s15 + $0x68] sm:$0xff] }
  0x76   : > { %2428 = vmatprep.subr.bf16.mxu1 %v2734_v24  ;;  %846 = vmatprep.mubr.bf16.mxu0 %v491_v27  ;;  %v1244_v24 = vld [vmem:[%s3133_s29 + $0x88] sm:$0xff]  ;;  %v511_v26 = vunpack.c.l.s8.bf16 %v467_v23  ;;  %v1245_v27 = vld [vmem:[%s3133_s29 + $0x90] sm:$0xff]  ;;  %v515_v36 = vunpack.c.h.s8.bf16 %v467_v23 }
  0x77   : > { %1316 = vperm.xlu1 %2715, %v1238_v9   ;;  %1321 = vperm.xlu0 %2714, %v1239_v12   ;;  %v516_v9 = vunpack.c.h.s8.bf16 %v468_v1  ;;  %v472_v12 = vld [vmem:[%s3122_s15 + $0x90] sm:$0xff] }
  0x78   : > { %2563 = vmatpush3.bf16.msra.mxu0 %v2748_v8 }
  0x79   : > { %2429 = vmatpush3.bf16.msra.mxu1 %v2735_v29  ;;  %v1246_v29 = vld [vmem:[%s3133_s29 + $0x98] sm:$0xff] }
  0x7a   : > { %2430 = vmatprep.subr.bf16.mxu1 %v2736_v31  ;;  %v466_v31 = vld [vmem:[%s3122_s15 + $0x60] sm:$0xff] }
  0x7b   : > { %1326 = vperm.xlu1 %2715, %v1240_v14   ;;  %1331 = vperm.xlu0 %2714, %v1241_v17   ;;  %v514_v45 = vunpack.c.h.s8.bf16 %v466_v31  ;;  %v477_v17 = vld [vmem:[%s3122_s15 + $0xb8] sm:$0xff] }
  0x7c   : > { %943 = vmatmul.mubr.bf16.gmra.mxu1 %v538_v33  ;;  %847 = vmatmul.mubr.bf16.gmra.mxu0 %v490_v39  ;;  %v501_v33 = vunpack.c.h.s8.bf16 %v461_v19  ;;  %v465_v39 = vld [vmem:[%s3122_s15 + $0x58] sm:$0xff]  ;;  %v529_v19 = vunpack.c.l.s8.bf16 %v477_v17 }
  0x7d   : > { %2431 = vmatpush3.bf16.msra.mxu1 %v2737_v34  ;;  %950 = vmatprep.mubr.bf16.mxu1 %v543_v35  ;;  %v1248_v34 = vld [vmem:[%s3133_s29 + $0xa8] sm:$0xff]  ;;  %v510_v35 = vunpack.c.l.s8.bf16 %v466_v31  ;;  %v505_v42 = vunpack.c.l.s8.bf16 %v465_v39  ;;  %v480_v31 = vld [vmem:[%s3122_s15 + $0xd0] sm:$0xff] }
  0x7e   : > { %2432 = vmatprep.subr.bf16.mxu1 %v2738_v37  ;;  %854 = vmatprep.mubr.bf16.mxu0 %v495_v41  ;;  %v1249_v37 = vld [vmem:[%s3133_s29 + $0xb0] sm:$0xff]  ;;  %v1251_v41 = vld [vmem:[%s3133_s29 + $0xc0] sm:$0xff] }
  0x7f   : > { %1336 = vperm.xlu1 %2715, %v1242_v18   ;;  %1341 = vperm.xlu0 %2714, %v1243_v21   ;;  %v524_v18 = vunpack.c.h.s8.bf16 %v472_v12  ;;  %v476_v21 = vld [vmem:[%s3122_s15 + $0xb0] sm:$0xff] }
  0x80   : > { %v528_v23 = vunpack.c.l.s8.bf16 %v476_v21  ;;  %v532_v28 = vunpack.c.h.s8.bf16 %v476_v21 }
  0x81   : > { %2433 = vmatpush3.bf16.msra.mxu1 %v2739_v43  ;;  %v471_v43 = vld [vmem:[%s3122_s15 + $0x88] sm:$0xff] }
  0x82   : > { %2434 = vmatprep.subr.bf16.mxu1 %v2740_v46  ;;  %v519_v46 = vunpack.c.l.s8.bf16 %v471_v43 }
  0x83   : > { %1346 = vperm.xlu1 %2715, %v1244_v24   ;;  %1351 = vperm.xlu0 %2714, %v1245_v27   ;;  %v533_v24 = vunpack.c.h.s8.bf16 %v477_v17  ;;  %v481_v27 = vld [vmem:[%s3122_s15 + $0xd8] sm:$0xff] }
  0x84   : > { %951 = vmatmul.mubr.bf16.gmra.mxu1 %v542_v47  ;;  %855 = vmatmul.mubr.bf16.gmra.mxu0 %v494_v55  ;;  %v1253_v47 = vld [vmem:[%s3133_s29 + $0xd0] sm:$0xff] }
  0x85   : > { %2435 = vmatpush3.bf16.msra.mxu1 %v2741_v50  ;;  %958 = vmatprep.mubr.bf16.mxu1 %v547_v51  ;;  %v504_v50 = vunpack.c.l.s8.bf16 %v464_v48  ;;  %v470_v51 = vld [vmem:[%s3122_s15 + $0x80] sm:$0xff] }
  0x86   : > { %2436 = vmatprep.subr.bf16.mxu1 %v2742_v53  ;;  %862 = vmatprep.mubr.bf16.mxu0 %v499_v58  ;;  %v509_v53 = vunpack.c.h.s8.bf16 %v465_v39  ;;  %v518_v55 = vunpack.c.l.s8.bf16 %v470_v51  ;;  %v1258_v58 = vld [vmem:[%s3133_s29 + $0xf8] sm:$0xff] }
  0x87   : > { %1356 = vperm.xlu1 %2715, %v1246_v29   ;;  %1361 = vperm.xlu0 %2714, %v1247_v32   ;;  %v537_v29 = vunpack.c.l.s8.bf16 %v481_v27  ;;  %v536_v32 = vunpack.c.l.s8.bf16 %v480_v31 }
  0x89   : > { %2437 = vmatpush3.bf16.msra.mxu1 %v2743_v54  ;;  %v1256_v54 = vld [vmem:[%s3133_s29 + $0xe8] sm:$0xff] }
  0x8a   : > { %2438 = vmatprep.subr.bf16.mxu1 %v2744_v56  ;;  %v523_v56 = vunpack.c.h.s8.bf16 %v471_v43 }
  0x8b   : > { %1366 = vperm.xlu1 %2715, %v1248_v34   ;;  %1371 = vperm.xlu0 %2714, %v1249_v37   ;;  %v485_v34 = vld [vmem:[%s3122_s15 + $0xf8] sm:$0xff]  ;;  %v484_v37 = vld [vmem:[%s3122_s15 + $0xf0] sm:$0xff] }
  0x8c   : > { %959 = vmatmul.mubr.bf16.gmra.mxu1 %v546_v63  ;;  %863 = vmatmul.mubr.bf16.gmra.mxu0 %v498_v4  ;;  %v522_v63 = vunpack.c.h.s8.bf16 %v470_v51  ;;  %v517_v4 = vunpack.c.h.s8.bf16 %v469_v59  ;;  %v549_v39 = vunpack.c.h.s8.bf16 %v485_v34 }
  0x8d   : > { %2439 = vmatpush3.bf16.msra.mxu1 %v2745_v62  ;;  %999 = vmatprep.mubr.bf16.mxu1 %v489_v0  ;;  %v475_v62 = vld [vmem:[%s3122_s15 + $0xa8] sm:$0xff] }
  0x8e   : > { %2440 = vmatprep.subr.bf16.mxu1 %v2746_v3  ;;  %870 = vmatprep.mubr.bf16.mxu0 %v503_v5  ;;  %v527_v0 = vunpack.c.l.s8.bf16 %v475_v62  ;;  %v474_v3 = vld [vmem:[%s3122_s15 + $0xa0] sm:$0xff]  ;;  %v531_v6 = vunpack.c.h.s8.bf16 %v475_v62 }
  0x8f   : > { %1376 = vperm.xlu1 %2715, %v1250_v38   ;;  %1381 = vperm.xlu0 %2714, %v1251_v41   ;;  %v526_v5 = vunpack.c.l.s8.bf16 %v474_v3  ;;  %v530_v11 = vunpack.c.h.s8.bf16 %v474_v3  ;;  %v544_v38 = vunpack.c.l.s8.bf16 %v484_v37 }
  0x91   : > { %2441 = vmatpush3.bf16.msra.mxu1 %v2747_v7  ;;  %v473_v7 = vld [vmem:[%s3122_s15 + $0x98] sm:$0xff]  ;;  %s2842_s15 = scalar_lea.vmem %s2841_s9, 8192 }
  0x92   : > { %v525_v14 = vunpack.c.h.s8.bf16 %v473_v7  ;;  %p2844_p10 = scmp.lt.s32.totalorder %s2842_s15, %s2836_s27 }
  0x93   : > { %1386 = vperm.xlu1 %2715, %v1252_v44   ;;  %1391 = vperm.xlu0 %2714, %v1253_v47  }
  0x94   : > { %1000 = vmatmul.mubr.bf16.vlgmr.msra.gmra.mxu1 %v488_v10  ;;  %871 = vmatmul.mubr.bf16.gmra.mxu0 %v502_v15  ;;  %v521_v10 = vunpack.c.l.s8.bf16 %v473_v7  ;;  %v2749_v15 = vld [vmem:[#allocation8 + $0x30] sm:$0xff]   ;;  %p2845_p13 = por %p2844_p10, %p2843_p8 }
  0x95   : > { %1007 = vmatprep.mubr.bf16.mxu1 %v493_v13  ;;  %878 = vmatprep.mubr.bf16.mxu0 %v507_v16  ;;  %v520_v13 = vunpack.c.l.s8.bf16 %v472_v12  ;;  %v2750_v16 = vld [vmem:[#allocation8 + $0x28] sm:$0xff]  }
  0x96   : > { %2564 = vmatprep.subr.bf16.mxu0 %v2749_v15  ;;  %p2846_p0 = pnand %p2845_p13, %p2839_p3 }
  0x97   : > { %1396 = vperm.xlu1 %2715, %v1254_v49   ;;  %1401 = vperm.xlu0 %2714, %v1255_v52  }
  0x98   : > { %2565 = vmatpush3.bf16.msra.mxu0 %v2749_v15 }
  0x99   : > { %2566 = vmatprep.subr.bf16.mxu0 %v2750_v16 }
  0x9b   : > { %1406 = vperm.xlu1 %2715, %v1256_v54   ;;  %1411 = vperm.xlu0 %2714, %v1257_v57  }
  0x9c   : > { %1008 = vmatmul.mubr.bf16.gmra.mxu1 %v492_v20  ;;  %879 = vmatmul.mubr.bf16.gmra.mxu0 %v506_v25  ;;  %v2751_v20 = vld [vmem:[#allocation8 + $0x20] sm:$0xff]   ;;  %v2753_v25 = vld [vmem:[#allocation8 + $0x10] sm:$0xff]  }
  0x9d   : > { %1015 = vmatprep.mubr.bf16.mxu1 %v497_v22  ;;  %886 = vmatprep.mubr.bf16.mxu0 %v511_v26  ;;  %v2752_v22 = vld [vmem:[#allocation8 + $0x18] sm:$0xff]   ;;  %v2754_v26 = vld [vmem:[#allocation8 + $0x8] sm:$0xff]  }
  0x9e   : > { %2567 = vmatpush3.bf16.msra.mxu0 %v2750_v16 }
  0x9f   : > { %1416 = vperm.xlu1 %2715, %v1258_v58   ;;  %2568 = vmatprep.subr.bf16.mxu0 %v2751_v20 }
  0xa2   : > { %2569 = vmatpush3.bf16.msra.mxu0 %v2751_v20 }
  0xa3   : > { %2570 = vmatprep.subr.bf16.mxu0 %v2752_v22 }
  0xa4   : > { %1016 = vmatmul.mubr.bf16.gmra.mxu1 %v496_v30  ;;  %887 = vmatmul.mubr.bf16.gmra.mxu0 %v510_v35  ;;  %v2755_v30 = vld [vmem:[#allocation8] sm:$0xff]   ;;  %v540_v35 = vunpack.c.h.s8.bf16 %v480_v31 }
  0xa5   : > { %1023 = vmatprep.mubr.bf16.mxu1 %v501_v33  ;;  %894 = vmatprep.mubr.bf16.mxu0 %v515_v36  ;;  %v541_v33 = vunpack.c.h.s8.bf16 %v481_v27  ;;  %v545_v36 = vunpack.c.l.s8.bf16 %v485_v34 }
  0xa6   : > { %2571 = vmatpush3.bf16.msra.mxu0 %v2752_v22  ;;  %v2236_v22 = vld [vmem:[%s3108_s11] sm:$0xff]  }
  0xa7   : > { %2572 = vmatprep.subr.bf16.mxu0 %v2753_v25 }
  0xaa   : > { %2573 = vmatpush3.bf16.msra.mxu0 %v2753_v25 }
  0xab   : > { %2574 = vmatprep.subr.bf16.mxu0 %v2754_v26 }
  0xac   : > { %1024 = vmatmul.mubr.bf16.gmra.mxu1 %v500_v40  ;;  %895 = vmatmul.mubr.bf16.gmra.mxu0 %v514_v45  ;;  %v548_v40 = vunpack.c.h.s8.bf16 %v484_v37 }
  0xad   : > { %1031 = vmatprep.mubr.bf16.mxu1 %v505_v42  ;;  %902 = vmatprep.mubr.bf16.mxu0 %v519_v46 }
  0xae   : > { %2575 = vmatpush3.bf16.msra.mxu0 %v2754_v26 }
  0xaf   : > { %2576 = vmatprep.subr.bf16.mxu0 %v2755_v30 }
  0xb2   : > { %2577 = vmatpush3.bf16.msra.mxu0 %v2755_v30 }
  0xb4   : > { %1032 = vmatmul.mubr.bf16.gmra.mxu1 %v504_v50  ;;  %903 = vmatmul.mubr.bf16.gmra.mxu0 %v518_v55 }
  0xb5   : > { %1039 = vmatprep.mubr.bf16.mxu1 %v509_v53  ;;  %910 = vmatprep.mubr.bf16.mxu0 %v523_v56 }
  0xbc   : > { %1040 = vmatmul.mubr.bf16.gmra.mxu1 %v508_v60  ;;  %911 = vmatmul.mubr.bf16.gmra.mxu0 %v522_v63 }
  0xbd   : > { %1047 = vmatprep.mubr.bf16.mxu1 %v513_v61  ;;  %918 = vmatprep.mubr.bf16.mxu0 %v527_v0 }
  0xc4   : > { %1048 = vmatmul.mubr.bf16.gmra.mxu1 %v512_v2  ;;  %919 = vmatmul.mubr.bf16.gmra.mxu0 %v526_v5 }
  0xc5   : > { %1055 = vmatprep.mubr.bf16.mxu1 %v517_v4  ;;  %926 = vmatprep.mubr.bf16.mxu0 %v531_v6 }
  0xcc   : > { %1056 = vmatmul.mubr.bf16.gmra.mxu1 %v516_v9  ;;  %927 = vmatmul.mubr.bf16.gmra.mxu0 %v530_v11 }
  0xcd   : > { %1063 = vmatprep.mubr.bf16.mxu1 %v521_v10 }
  0xd4   : > { %1064 = vmatmul.mubr.bf16.gmra.mxu1 %v520_v13 }
  0xd5   : > { %1071 = vmatprep.mubr.bf16.mxu1 %v525_v14 }
  0xda   : > { %v1262_v20 = vpop.permute.xlu0 %1261 }
  0xdc   : > { %1072 = vmatmul.mubr.bf16.gmra.mxu1 %v524_v18 }
  0xdd   : > { %1079 = vmatprep.mubr.bf16.mxu1 %v529_v19 }
  0xe4   : > { %1080 = vmatmul.mubr.bf16.gmra.mxu1 %v528_v23 }
  0xe5   : > { %1087 = vmatprep.mubr.bf16.mxu1 %v533_v24 }
  0xec   : > { %1088 = vmatmul.mubr.bf16.gmra.mxu1 %v532_v28  ;;  %v2237_v28 = vunpack.c.l.bf16 %v2236_v22 }
  0xed   : > { %1095 = vmatprep.mubr.bf16.mxu1 %v537_v29 }
  0xf4   : > { %1096 = vmatmul.mubr.bf16.gmra.mxu1 %v536_v32  ;;  %v2238_v32 = vunpack.c.h.bf16 %v2236_v22 }
  0xf5   : > { %1103 = vmatprep.mubr.bf16.mxu1 %v541_v33 }
  0xfc   : > { %1104 = vmatmul.mubr.bf16.gmra.mxu1 %v540_v35  ;;  %v1267_v35 = vpop.permute.xlu0 %1266 }
  0xfd   : > { %1111 = vmatprep.mubr.bf16.mxu1 %v545_v36 }
 0x104   : > { %1112 = vmatmul.mubr.bf16.gmra.mxu1 %v544_v38 }
 0x105   : > { %1119 = vmatprep.mubr.bf16.mxu1 %v549_v39  ;;  %v1547_v39 = vmul.f32 0.1, %v2237_v28 }
 0x10c   : > { %1120 = vmatmul.mubr.bf16.gmra.mxu1 %v548_v40 }
 0x134   : > { %v2402_v41 = vpop.f32.mrf.mxu1  ;;  %v2330_v44 = vpop.f32.mrf.mxu0 }
 0x136   : > { %v2403_v42 = vpop.f32.mrf.mxu1  ;;  %v2331_v46 = vpop.f32.mrf.mxu0 }
 0x137   : > { %v3194_v43 = vadd.f32 %v2403_v42, %v2402_v41  ;;  %v2332_v17 = vadd.f32 %v2331_v46, %v2330_v44  ;;  %v1548_v42 = vmul.f32 0.1, %v2238_v32  ;;  %v2299_v46 = vld [vmem:[%s3108_s11 + $0x8] sm:$0xff]   ;;  %v1282_v32 = vpop.permute.xlu0 %1281 }
 0x138   : > { %v2405_v45 = vpop.f32.mrf.mxu1  ;;  %v2333_v49 = vpop.f32.mrf.mxu0 }
 0x13a   : > { %v2406_v47 = vpop.f32.mrf.mxu1  ;;  %v2334_v51 = vpop.f32.mrf.mxu0 }
 0x13b   : > { %v3196_v48 = vadd.f32 %v2406_v47, %v2405_v45  ;;  %v2335_v26 = vadd.f32 %v2334_v51, %v2333_v49  ;;  %v1272_v49 = vpop.permute.xlu1 %1271 }
 0x13c   : > { %v2408_v50 = vpop.f32.mrf.mxu1  ;;  %v2336_v54 = vpop.f32.mrf.mxu0 }
 0x13e   : > { %v2409_v52 = vpop.f32.mrf.mxu1  ;;  %v2337_v56 = vpop.f32.mrf.mxu0 }
 0x13f   : > { %v3198_v53 = vadd.f32 %v2409_v52, %v2408_v50  ;;  %v2338_v37 = vadd.f32 %v2337_v56, %v2336_v54  ;;  %v2242_v56 = vunpack.c.h.bf16 %v2299_v46 }
 0x140   : > { %v2411_v55 = vpop.f32.mrf.mxu1  ;;  %v2339_v59 = vpop.f32.mrf.mxu0 }
 0x141   : > { %v1550_v22 = vmul.f32 0.1, %v2242_v56  ;;  %v2301_v56 = vld [vmem:[%s3108_s11 + $0x18] sm:$0xff]  }
 0x142   : > { %v2412_v57 = vpop.f32.mrf.mxu1  ;;  %v2340_v61 = vpop.f32.mrf.mxu0 }
 0x143   : > { %v3200_v58 = vadd.f32 %v2412_v57, %v2411_v55  ;;  %v2341_v55 = vadd.f32 %v2340_v61, %v2339_v59 }
 0x144   : > { %v2414_v60 = vpop.f32.mrf.mxu1  ;;  %v3204_v0 = vpop.f32.mrf.mxu0 }
 0x146   : > { %v2415_v62 = vpop.f32.mrf.mxu1  ;;  %v2343_v2 = vpop.f32.mrf.mxu0 }
 0x147   : > { %v3202_v63 = vadd.f32 %v2415_v62, %v2414_v60  ;;  %v2241_v60 = vunpack.c.l.bf16 %v2299_v46 }
 0x148   : > { %v2417_v1 = vpop.f32.mrf.mxu1  ;;  %v3208_v5 = vpop.f32.mrf.mxu0 }
 0x14a   : > { %v2418_v3 = vpop.f32.mrf.mxu1  ;;  %v3210_v7 = vpop.f32.mrf.mxu0 }
 0x14b   : > { %v3206_v4 = vadd.f32 %v2418_v3, %v2417_v1 }
 0x14c   : > { %v2420_v6 = vpop.f32.mrf.mxu1  ;;  %v3214_v10 = vpop.f32.mrf.mxu0 }
 0x14e   : > { %v2421_v8 = vpop.f32.mrf.mxu1  ;;  %v3216_v12 = vpop.f32.mrf.mxu0 }
 0x14f   : > { %v3212_v9 = vadd.f32 %v2421_v8, %v2420_v6 }
 0x150   : > { %v2423_v11 = vpop.f32.mrf.mxu1  ;;  %v3220_v15 = vpop.f32.mrf.mxu0 }
 0x152   : > { %v2424_v13 = vpop.f32.mrf.mxu1  ;;  %v3222_v18 = vpop.f32.mrf.mxu0 }
 0x153   : > { %v3218_v14 = vadd.f32 %v2424_v13, %v2423_v11 }
 0x154   : > { %v2442_v16 = vpop.f32.mrf.mxu1  ;;  %v3225_v23 = vpop.f32.mrf.mxu0 }
 0x156   : > { %v2443_v19 = vpop.f32.mrf.mxu1  ;;  %v3227_v27 = vpop.f32.mrf.mxu0 }
 0x157   : > { %v2444_v21 = vadd.f32 %v2443_v19, %v2442_v16  ;;  %v2344_v16 = vadd.f32 %v2343_v2, %v3204_v0  ;;  %v1277_v19 = vpop.permute.xlu1 %1276  ;;  %v2347_v0 = vadd.f32 %v3210_v7, %v3208_v5  ;;  %v2350_v7 = vadd.f32 %v3216_v12, %v3214_v10  ;;  %v1292_v12 = vpop.permute.xlu0 %1291 }
 0x158   : > { %v2445_v24 = vpop.f32.mrf.mxu1  ;;  %v3229_v33 = vpop.f32.mrf.mxu0 }
 0x159   : > { %v1002_v25 = vadd.f32 %v2444_v21, %v2332_v17  ;;  %v1549_v17 = vmul.f32 0.1, %v2241_v60 }
 0x15a   : > { %v2446_v29 = vpop.f32.mrf.mxu1  ;;  %v3231_v38 = vpop.f32.mrf.mxu0 }
 0x15b   : > { %v1419_v30 = vmul.f32 %v1262_v20, %v1002_v25  ;;  %v2447_v31 = vadd.f32 %v2446_v29, %v2445_v24 }
 0x15c   : > { %v2448_v34 = vpop.f32.mrf.mxu1  ;;  %v3234_v47 = vpop.f32.mrf.mxu0 }
 0x15d   : > { %v1005_v36 = vadd.f32 %v2447_v31, %v2335_v26  ;;  %v1451_v41 = vmul.f32 0.9, %v1419_v30  ;;  %v2300_v26 = vld [vmem:[%s3108_s11 + $0x10] sm:$0xff]  }
 0x15e   : > { %v2449_v40 = vpop.f32.mrf.mxu1  ;;  %v3236_v57 = vpop.f32.mrf.mxu0 }
 0x15f   : > { %v1420_v44 = vmul.f32 %v1267_v35, %v1005_v36  ;;  %v2450_v45 = vadd.f32 %v2449_v40, %v2448_v34  ;;  %v3238_v62 = vadd.f32 %v1547_v39, %v1451_v41  ;;  %v2245_v35 = vunpack.c.l.bf16 %v2300_v26 }
 0x160   : > { %v2451_v50 = vpop.f32.mrf.mxu1  ;;  %v3242_v8 = vpop.f32.mrf.mxu0  ;;  %v2246_v36 = vunpack.c.h.bf16 %v2300_v26 }
 0x161   : > { %v1452_v51 = vmul.f32 0.9, %v1420_v44  ;;  %v1010_v52 = vadd.f32 %v2450_v45, %v2338_v37 }
 0x162   : > { %v2452_v54 = vpop.f32.mrf.mxu1  ;;  %v3247_v61 = vpop.f32.mrf.mxu0 }
 0x163   : > { %v3240_v1 = vadd.f32 %v1548_v42, %v1452_v51  ;;  %v1421_v3 = vmul.f32 %v1272_v49, %v1010_v52  ;;  %v2453_v6 = vadd.f32 %v2452_v54, %v2451_v50  ;;  %v1287_v49 = vpop.permute.xlu1 %1286  ;;  %v1551_v51 = vmul.f32 0.1, %v2245_v35 }
 0x164   : > { %v2454_v11 = vpop.f32.mrf.mxu1  ;;  %v3250_v28 = vpop.f32.mrf.mxu0  ;;  %v1552_v54 = vmul.f32 0.1, %v2246_v36 }
 0x165   : > { %v1013_v13 = vadd.f32 %v2453_v6, %v2341_v55  ;;  %v1611_v59 = vpack.c.bf16 %v3240_v1, %v3238_v62  ;;  %v1453_v21 = vmul.f32 0.9, %v1421_v3 }
 0x166   : > { %v2455_v20 = vpop.f32.mrf.mxu1  ;;  %v3254_v2 = vpop.f32.mrf.mxu0 }
 0x167   : > { %v1422_v24 = vmul.f32 %v1277_v19, %v1013_v13  ;;  %v2456_v25 = vadd.f32 %v2455_v20, %v2454_v11  ;;  %2578 = vmatprep.mubr.bf16.mxu0 %v1611_v59  ;;  %v3256_v37 = vadd.f32 %v1549_v17, %v1453_v21  ;;  %v2249_v17 = vunpack.c.l.bf16 %v2301_v56 }
 0x168   : > { %v2457_v29 = vpop.f32.mrf.mxu1  ;;  %v3260_v42 = vpop.f32.mrf.mxu0  ;;  %v2250_v19 = vunpack.c.h.bf16 %v2301_v56 }
 0x169   : > { %v1454_v30 = vmul.f32 0.9, %v1422_v24  ;;  %v1018_v31 = vadd.f32 %v2456_v25, %v2344_v16  ;;  %v2353_v16 = vadd.f32 %v3222_v18, %v3220_v15  ;;  %v2356_v15 = vadd.f32 %v3227_v27, %v3225_v23 }
 0x16a   : > { %v2458_v34 = vpop.f32.mrf.mxu1  ;;  %v3266_v46 = vpop.f32.mrf.mxu0  ;;  %v2359_v23 = vadd.f32 %v3231_v38, %v3229_v33  ;;  %v2362_v33 = vadd.f32 %v3236_v57, %v3234_v47  ;;  %v2365_v47 = vadd.f32 %v3247_v61, %v3242_v8 }
 0x16b   : > { %v3258_v39 = vadd.f32 %v1550_v22, %v1454_v30  ;;  %v1423_v40 = vmul.f32 %v1282_v32, %v1018_v31  ;;  %v2459_v41 = vadd.f32 %v2458_v34, %v2457_v29  ;;  %v1297_v31 = vpop.permute.xlu1 %1296  ;;  %v1553_v32 = vmul.f32 0.1, %v2249_v17 }
 0x16c   : > { %v2460_v44 = vpop.f32.mrf.mxu1  ;;  %v3269_v3 = vpop.f32.mrf.mxu0 }
 0x16d   : > { %v1612_v45 = vpack.c.bf16 %v3258_v39, %v3256_v37  ;;  %v1021_v5 = vadd.f32 %v2459_v41, %v2347_v0  ;;  %v1455_v52 = vmul.f32 0.9, %v1423_v40  ;;  %v1554_v40 = vmul.f32 0.1, %v2250_v19  ;;  %v2302_v41 = vld [vmem:[%s3108_s11 + $0x20] sm:$0xff]  }
 0x16e   : > { %v2461_v50 = vpop.f32.mrf.mxu1  ;;  %v3273_v10 = vpop.f32.mrf.mxu0 }
 0x16f   : > { %v1424_v55 = vmul.f32 %v1287_v49, %v1021_v5  ;;  %v2462_v60 = vadd.f32 %v2461_v50, %v2460_v44  ;;  %2579 = vmatmul.mubr.bf16.vlgmr.msra.gmra.mxu0 %v1612_v45  ;;  %v3275_v22 = vadd.f32 %v1551_v51, %v1455_v52  ;;  %v1302_v49 = vpop.permute.xlu0 %1301  ;;  %v2253_v51 = vunpack.c.l.bf16 %v2302_v41 }
 0x170   : > { %v2463_v6 = vpop.f32.mrf.mxu1  ;;  %v3279_v25 = vpop.f32.mrf.mxu0  ;;  %v2254_v52 = vunpack.c.h.bf16 %v2302_v41 }
 0x171   : > { %v1456_v11 = vmul.f32 0.9, %v1424_v55  ;;  %v1026_v13 = vadd.f32 %v2462_v60, %v2350_v7 }
 0x172   : > { %v2464_v59 = vpop.f32.mrf.mxu1  ;;  %v3285_v30 = vpop.f32.mrf.mxu0 }
 0x173   : > { %v1425_v20 = vmul.f32 %v1292_v12, %v1026_v13  ;;  %v2465_v21 = vadd.f32 %v2464_v59, %v2463_v6  ;;  %v3277_v24 = vadd.f32 %v1552_v54, %v1456_v11  ;;  %v1307_v13 = vpop.permute.xlu1 %1306  ;;  %v1555_v59 = vmul.f32 0.1, %v2253_v51 }
 0x174   : > { %v2466_v26 = vpop.f32.mrf.mxu1  ;;  %v3288_v44 = vpop.f32.mrf.mxu0 }
 0x175   : > { %v1029_v29 = vadd.f32 %v2465_v21, %v2353_v16  ;;  %v1613_v18 = vpack.c.bf16 %v3277_v24, %v3275_v22  ;;  %v1457_v34 = vmul.f32 0.9, %v1425_v20 }
 0x176   : > { %v2467_v0 = vpop.f32.mrf.mxu1  ;;  %v3292_v27 = vpop.f32.mrf.mxu0 }
 0x177   : > { %v1426_v35 = vmul.f32 %v1297_v31, %v1029_v29  ;;  %v2468_v36 = vadd.f32 %v2467_v0, %v2466_v26  ;;  %2582 = vmatprep.mubr.bf16.mxu0 %v1613_v18  ;;  %v3294_v54 = vadd.f32 %v1553_v32, %v1457_v34  ;;  %v1556_v26 = vmul.f32 0.1, %v2254_v52  ;;  %v2303_v29 = vld [vmem:[%s3108_s11 + $0x28] sm:$0xff]   ;;  %v1312_v18 = vpop.permute.xlu0 %1311 }
 0x178   : > { %v2469_v45 = vpop.f32.mrf.mxu1  ;;  %v3298_v6 = vpop.f32.mrf.mxu0  ;;  %v2257_v32 = vunpack.c.l.bf16 %v2303_v29  ;;  %v2258_v34 = vunpack.c.h.bf16 %v2303_v29 }
 0x179   : > { %v1458_v5 = vmul.f32 0.9, %v1426_v35  ;;  %v1034_v7 = vadd.f32 %v2468_v36, %v2356_v15 }
 0x17a   : > { %v2470_v50 = vpop.f32.mrf.mxu1  ;;  %v3304_v17 = vpop.f32.mrf.mxu0 }
 0x17b   : > { %v1427_v55 = vmul.f32 %v1302_v49, %v1034_v7  ;;  %v2471_v60 = vadd.f32 %v2470_v50, %v2469_v45  ;;  %v3296_v56 = vadd.f32 %v1554_v40, %v1458_v5  ;;  %v1317_v7 = vpop.permute.xlu1 %1316  ;;  %v2368_v49 = vadd.f32 %v3254_v2, %v3250_v28 }
 0x17c   : > { %v2472_v11 = vpop.f32.mrf.mxu1  ;;  %v3309_v35 = vpop.f32.mrf.mxu0  ;;  %v1557_v50 = vmul.f32 0.1, %v2257_v32  ;;  %v2371_v28 = vadd.f32 %v3266_v46, %v3260_v42 }
 0x17d   : > { %v1037_v16 = vadd.f32 %v2471_v60, %v2359_v23  ;;  %v1614_v38 = vpack.c.bf16 %v3296_v56, %v3294_v54  ;;  %v1459_v19 = vmul.f32 0.9, %v1427_v55 }
 0x17e   : > { %v2473_v12 = vpop.f32.mrf.mxu1  ;;  %v3319_v51 = vpop.f32.mrf.mxu0 }
 0x17f   : > { %v1428_v20 = vmul.f32 %v1307_v13, %v1037_v16  ;;  %v2474_v21 = vadd.f32 %v2473_v12, %v2472_v11  ;;  %2583 = vmatmul.mubr.bf16.gmra.mxu0 %v1614_v38  ;;  %v3311_v41 = vadd.f32 %v1555_v59, %v1459_v19  ;;  %v1558_v11 = vmul.f32 0.1, %v2258_v34  ;;  %v2304_v13 = vld [vmem:[%s3108_s11 + $0x30] sm:$0xff]  }
 0x180   : > { %v2475_v15 = vpop.f32.mrf.mxu1  ;;  %v2261_v59 = vunpack.c.l.bf16 %v2304_v13  ;;  %v2262_v19 = vunpack.c.h.bf16 %v2304_v13 }
 0x181   : > { %v1460_v31 = vmul.f32 0.9, %v1428_v20  ;;  %v1042_v0 = vadd.f32 %v2474_v21, %v2362_v33  ;;  %v1322_v33 = vpop.permute.xlu0 %1321  ;;  %v3324_v20 = vpop.f32.mrf.mxu0 }
 0x182   : > { %v2476_v57 = vpop.f32.mrf.mxu1 }
 0x183   : > { %v1429_v36 = vmul.f32 %v1312_v18, %v1042_v0  ;;  %v2477_v40 = vadd.f32 %v2476_v57, %v2475_v15  ;;  %v3313_v45 = vadd.f32 %v1556_v26, %v1460_v31  ;;  %v1327_v31 = vpop.permute.xlu1 %1326  ;;  %v1559_v57 = vmul.f32 0.1, %v2261_v59  ;;  %v3334_v32 = vpop.f32.mrf.mxu0 }
 0x184   : > { %v2478_v5 = vpop.f32.mrf.mxu1 }
 0x185   : > { %v1045_v23 = vadd.f32 %v2477_v40, %v2365_v47  ;;  %v1615_v8 = vpack.c.bf16 %v3313_v45, %v3311_v41  ;;  %v1461_v52 = vmul.f32 0.9, %v1429_v36  ;;  %v2374_v47 = vadd.f32 %v3273_v10, %v3269_v3 }
 0x186   : > { %v2479_v61 = vpop.f32.mrf.mxu1  ;;  %v2377_v3 = vadd.f32 %v3285_v30, %v3279_v25 }
 0x187   : > { %v1430_v55 = vmul.f32 %v1317_v7, %v1045_v23  ;;  %v2480_v60 = vadd.f32 %v2479_v61, %v2478_v5  ;;  %2586 = vmatprep.mubr.bf16.mxu0 %v1615_v8  ;;  %v3326_v29 = vadd.f32 %v1557_v50, %v1461_v52  ;;  %v1560_v5 = vmul.f32 0.1, %v2262_v19  ;;  %v2305_v7 = vld [vmem:[%s3108_s11 + $0x38] sm:$0xff]  }
 0x188   : > { %v2481_v16 = vpop.f32.mrf.mxu1  ;;  %v2265_v50 = vunpack.c.l.bf16 %v2305_v7  ;;  %v2266_v52 = vunpack.c.h.bf16 %v2305_v7 }
 0x189   : > { %v1462_v38 = vmul.f32 0.9, %v1430_v55  ;;  %v1050_v12 = vadd.f32 %v2480_v60, %v2368_v49  ;;  %v1332_v49 = vpop.permute.xlu0 %1331  ;;  %v2390_v55 = vpop.f32.mrf.mxu0 }
 0x18a   : > { %v2482_v2 = vpop.f32.mrf.mxu1 }
 0x18b   : > { %v1431_v21 = vmul.f32 %v1322_v33, %v1050_v12  ;;  %v2483_v26 = vadd.f32 %v2482_v2, %v2481_v16  ;;  %v3328_v15 = vadd.f32 %v1558_v11, %v1462_v38  ;;  %v1337_v38 = vpop.permute.xlu1 %1336  ;;  %v1561_v2 = vmul.f32 0.1, %v2265_v50  ;;  %v2391_v59 = vpop.f32.mrf.mxu0 }
 0x18c   : > { %v2484_v18 = vpop.f32.mrf.mxu1 }
 0x18d   : > { %v1053_v0 = vadd.f32 %v2483_v26, %v2371_v28  ;;  %v1616_v42 = vpack.c.bf16 %v3328_v15, %v3326_v29  ;;  %v1463_v34 = vmul.f32 0.9, %v1431_v21  ;;  %v2380_v28 = vadd.f32 %v3292_v27, %v3288_v44 }
 0x18e   : > { %v2485_v46 = vpop.f32.mrf.mxu1 }
 0x18f   : > { %v1432_v36 = vmul.f32 %v1327_v31, %v1053_v0  ;;  %v2486_v40 = vadd.f32 %v2485_v46, %v2484_v18  ;;  %2587 = vmatmul.mubr.bf16.gmra.mxu0 %v1616_v42  ;;  %v3339_v13 = vadd.f32 %v1559_v57, %v1463_v34  ;;  %v1562_v18 = vmul.f32 0.1, %v2266_v52  ;;  %v2306_v31 = vld [vmem:[%s3108_s11 + $0x40] sm:$0xff]  }
 0x190   : > { %v2487_v23 = vpop.f32.mrf.mxu1  ;;  %v2383_v57 = vadd.f32 %v3304_v17, %v3298_v6  ;;  %v2269_v27 = vunpack.c.l.bf16 %v2306_v31  ;;  %v2270_v34 = vunpack.c.h.bf16 %v2306_v31 }
 0x191   : > { %v1464_v8 = vmul.f32 0.9, %v1432_v36  ;;  %v1058_v61 = vadd.f32 %v2486_v40, %v2374_v47  ;;  %v1342_v47 = vpop.permute.xlu0 %1341  ;;  %v2393_v36 = vpop.f32.mrf.mxu0 }
 0x192   : > { %v2488_v10 = vpop.f32.mrf.mxu1 }
 0x193   : > { %v1433_v60 = vmul.f32 %v1332_v49, %v1058_v61  ;;  %v2489_v11 = vadd.f32 %v2488_v10, %v2487_v23  ;;  %v3341_v16 = vadd.f32 %v1560_v5, %v1464_v8  ;;  %v1347_v8 = vpop.permute.xlu1 %1346  ;;  %v1563_v10 = vmul.f32 0.1, %v2269_v27  ;;  %v2394_v50 = vpop.f32.mrf.mxu0 }
 0x194   : > { %v2490_v33 = vpop.f32.mrf.mxu1 }
 0x195   : > { %v1061_v12 = vadd.f32 %v2489_v11, %v2377_v3  ;;  %v1617_v25 = vpack.c.bf16 %v3341_v16, %v3339_v13  ;;  %v1465_v19 = vmul.f32 0.9, %v1433_v60  ;;  %v2386_v3 = vadd.f32 %v3319_v51, %v3309_v35  ;;  %v2396_v51 = vpop.f32.mrf.mxu0 }
 0x196   : > { %v2491_v30 = vpop.f32.mrf.mxu1 }
 0x197   : > { %v1434_v21 = vmul.f32 %v1337_v38, %v1061_v12  ;;  %v2492_v26 = vadd.f32 %v2491_v30, %v2490_v33  ;;  %2590 = vmatprep.mubr.bf16.mxu0 %v1617_v25  ;;  %v3350_v7 = vadd.f32 %v1561_v2, %v1465_v19  ;;  %v1564_v33 = vmul.f32 0.1, %v2270_v34  ;;  %v2307_v38 = vld [vmem:[%s3108_s11 + $0x48] sm:$0xff]  }
 0x198   : > { %v2493_v0 = vpop.f32.mrf.mxu1  ;;  %v2389_v2 = vadd.f32 %v3334_v32, %v3324_v20  ;;  %v2273_v19 = vunpack.c.l.bf16 %v2307_v38  ;;  %v2397_v20 = vpop.f32.mrf.mxu0 }
 0x199   : > { %v1466_v42 = vmul.f32 0.9, %v1434_v21  ;;  %v1066_v46 = vadd.f32 %v2492_v26, %v2380_v28  ;;  %v1352_v28 = vpop.permute.xlu0 %1351  ;;  %v2274_v21 = vunpack.c.h.bf16 %v2307_v38 }
 0x19a   : > { %v2494_v44 = vpop.f32.mrf.mxu1  ;;  %v1565_v32 = vmul.f32 0.1, %v2273_v19 }
 0x19b   : > { %v1435_v40 = vmul.f32 %v1342_v47, %v1066_v46  ;;  %v2495_v5 = vadd.f32 %v2494_v44, %v2493_v0  ;;  %v3352_v23 = vadd.f32 %v1562_v18, %v1466_v42  ;;  %v1357_v42 = vpop.permute.xlu1 %1356 }
 0x19c   : > { %v2496_v49 = vpop.f32.mrf.mxu1 }
 0x19d   : > { %v1069_v61 = vadd.f32 %v2495_v5, %v2383_v57  ;;  %v1618_v6 = vpack.c.bf16 %v3352_v23, %v3350_v7  ;;  %v1467_v52 = vmul.f32 0.9, %v1435_v40  ;;  %v2392_v57 = vadd.f32 %v2391_v59, %v2390_v55 }
 0x19e   : > { %v2497_v17 = vpop.f32.mrf.mxu1 }
 0x19f   : > { %v1436_v60 = vmul.f32 %v1347_v8, %v1069_v61  ;;  %v2498_v11 = vadd.f32 %v2497_v17, %v2496_v49  ;;  %2591 = vmatmul.mubr.bf16.gmra.mxu0 %v1618_v6  ;;  %v3361_v31 = vadd.f32 %v1563_v10, %v1467_v52  ;;  %v1566_v49 = vmul.f32 0.1, %v2274_v21  ;;  %v2308_v8 = vld [vmem:[%s3108_s11 + $0x50] sm:$0xff]  }
 0x1a0   : > { %v2499_v12 = vpop.f32.mrf.mxu1  ;;  %v2395_v10 = vadd.f32 %v2394_v50, %v2393_v36  ;;  %v2277_v55 = vunpack.c.l.bf16 %v2308_v8  ;;  %v2278_v59 = vunpack.c.h.bf16 %v2308_v8 }
 0x1a1   : > { %v1468_v25 = vmul.f32 0.9, %v1436_v60  ;;  %v1074_v30 = vadd.f32 %v2498_v11, %v2386_v3  ;;  %v1362_v3 = vpop.permute.xlu0 %1361  ;;  %v2399_v60 = vpop.f32.mrf.mxu0 }
 0x1a2   : > { %v2500_v35 = vpop.f32.mrf.mxu1  ;;  %v1567_v50 = vmul.f32 0.1, %v2277_v55 }
 0x1a3   : > { %v1437_v26 = vmul.f32 %v1352_v28, %v1074_v30  ;;  %v2501_v18 = vadd.f32 %v2500_v35, %v2499_v12  ;;  %v3363_v0 = vadd.f32 %v1564_v33, %v1468_v25  ;;  %v1367_v25 = vpop.permute.xlu1 %1366  ;;  %v2400_v36 = vpop.f32.mrf.mxu0 }
 0x1a4   : > { %v2502_v47 = vpop.f32.mrf.mxu1 }
 0x1a5   : > { %v1077_v46 = vadd.f32 %v2501_v18, %v2389_v2  ;;  %v1619_v44 = vpack.c.bf16 %v3363_v0, %v3361_v31  ;;  %v1469_v34 = vmul.f32 0.9, %v1437_v26  ;;  %v2398_v2 = vadd.f32 %v2397_v20, %v2396_v51 }
 0x1a6   : > { %v2503_v27 = vpop.f32.mrf.mxu1 }
 0x1a7   : > { %v1438_v40 = vmul.f32 %v1357_v42, %v1077_v46  ;;  %v2504_v5 = vadd.f32 %v2503_v27, %v2502_v47  ;;  %2594 = vmatprep.mubr.bf16.mxu0 %v1619_v44  ;;  %v3368_v38 = vadd.f32 %v1565_v32, %v1469_v34  ;;  %v1568_v47 = vmul.f32 0.1, %v2278_v59  ;;  %v2309_v42 = vld [vmem:[%s3108_s11 + $0x58] sm:$0xff]   ;;  %v1372_v32 = vpop.permute.xlu0 %1371 }
 0x1a8   : > { %v2505_v61 = vpop.f32.mrf.mxu1  ;;  %v2401_v27 = vadd.f32 %v2400_v36, %v2399_v60  ;;  %v2282_v51 = vunpack.c.h.bf16 %v2309_v42 }
 0x1a9   : > { %v1470_v6 = vmul.f32 0.9, %v1438_v40  ;;  %v1082_v17 = vadd.f32 %v2504_v5, %v2392_v57  ;;  %v2281_v40 = vunpack.c.l.bf16 %v2309_v42 }
 0x1aa   : > { %v2506_v52 = vpop.f32.mrf.mxu1 }
 0x1ab   : > { %v1439_v11 = vmul.f32 %v1362_v3, %v1082_v17  ;;  %v2507_v33 = vadd.f32 %v2506_v52, %v2505_v61  ;;  %v3370_v12 = vadd.f32 %v1566_v49, %v1470_v6  ;;  %v1377_v17 = vpop.permute.xlu1 %1376  ;;  %v1569_v52 = vmul.f32 0.1, %v2281_v40 }
 0x1ac   : > { %v2508_v28 = vpop.f32.mrf.mxu1 }
 0x1ad   : > { %v1085_v30 = vadd.f32 %v2507_v33, %v2395_v10  ;;  %v1620_v35 = vpack.c.bf16 %v3370_v12, %v3368_v38  ;;  %v1471_v21 = vmul.f32 0.9, %v1439_v11  ;;  %v1570_v11 = vmul.f32 0.1, %v2282_v51  ;;  %v2310_v33 = vld [vmem:[%s3108_s11 + $0x60] sm:$0xff]   ;;  %v2311_v51 = vld [vmem:[%s3108_s11 + $0x68] sm:$0xff]  }
 0x1ae   : > { %v2509_v19 = vpop.f32.mrf.mxu1  ;;  %v2286_v36 = vunpack.c.h.bf16 %v2310_v33 }
 0x1af   : > { %v1440_v26 = vmul.f32 %v1367_v25, %v1085_v30  ;;  %v2510_v18 = vadd.f32 %v2509_v19, %v2508_v28  ;;  %2595 = vmatmul.mubr.bf16.gmra.mxu0 %v1620_v35  ;;  %v3375_v49 = vadd.f32 %v1567_v50, %v1471_v21  ;;  %v2285_v19 = vunpack.c.l.bf16 %v2310_v33 }
 0x1b0   : > { %v2511_v46 = vpop.f32.mrf.mxu1  ;;  %v1572_v40 = vmul.f32 0.1, %v2286_v36  ;;  %v2312_v36 = vld [vmem:[%s3108_s11 + $0x70] sm:$0xff]  }
 0x1b1   : > { %v1472_v57 = vmul.f32 0.9, %v1440_v26  ;;  %v1090_v44 = vadd.f32 %v2510_v18, %v2398_v2  ;;  %v1382_v2 = vpop.permute.xlu0 %1381 }
 0x1b2   : > { %v2512_v34 = vpop.f32.mrf.mxu1 }
 0x1b3   : > { %v1441_v20 = vmul.f32 %v1372_v32, %v1090_v44  ;;  %v2513_v5 = vadd.f32 %v2512_v34, %v2511_v46  ;;  %v3377_v8 = vadd.f32 %v1568_v47, %v1472_v57  ;;  %v1387_v57 = vpop.permute.xlu1 %1386 }
 0x1b4   : > { %v2514_v61 = vpop.f32.mrf.mxu1 }
 0x1b5   : > { %v1093_v3 = vadd.f32 %v2513_v5, %v2401_v27  ;;  %v1621_v6 = vpack.c.bf16 %v3377_v8, %v3375_v49  ;;  %v1473_v60 = vmul.f32 0.9, %v1441_v20 }
 0x1b6   : > { %v2515_v10 = vpop.f32.mrf.mxu1 }
 0x1b7   : > { %v1442_v55 = vmul.f32 %v1377_v17, %v1093_v3  ;;  %v2516_v59 = vadd.f32 %v2515_v10, %v2514_v61  ;;  %2598 = vmatprep.mubr.bf16.mxu0 %v1621_v6  ;;  %v3383_v26 = vadd.f32 %v1569_v52, %v1473_v60  ;;  %v1392_v3 = vpop.permute.xlu0 %1391  ;;  %v2289_v17 = vunpack.c.l.bf16 %v2311_v51 }
 0x1b8   : > { %v2517_v28 = vpop.f32.mrf.mxu1 }
 0x1b9   : > { %v1474_v25 = vmul.f32 0.9, %v1442_v55  ;;  %v1098_v30 = vadd.f32 %v2516_v59, %v3194_v43  ;;  %v1571_v43 = vmul.f32 0.1, %v2285_v19 }
 0x1ba   : > { %v2518_v35 = vpop.f32.mrf.mxu1 }
 0x1bb   : > { %v1443_v50 = vmul.f32 %v1382_v2, %v1098_v30  ;;  %v2519_v21 = vadd.f32 %v2518_v35, %v2517_v28  ;;  %v3385_v18 = vadd.f32 %v1570_v11, %v1474_v25  ;;  %v1397_v28 = vpop.permute.xlu1 %1396 }
 0x1bc   : > { %v2520_v47 = vpop.f32.mrf.mxu1 }
 0x1bd   : > { %v1101_v42 = vadd.f32 %v2519_v21, %v3196_v48  ;;  %v1622_v46 = vpack.c.bf16 %v3385_v18, %v3383_v26  ;;  %v1475_v27 = vmul.f32 0.9, %v1443_v50  ;;  %v2290_v48 = vunpack.c.h.bf16 %v2311_v51 }
 0x1be   : > { %v2521_v44 = vpop.f32.mrf.mxu1 }
 0x1bf   : > { %v1444_v32 = vmul.f32 %v1387_v57, %v1101_v42  ;;  %v2522_v34 = vadd.f32 %v2521_v44, %v2520_v47  ;;  %2599 = vmatmul.mubr.bf16.gmra.mxu0 %v1622_v46  ;;  %v3392_v60 = vadd.f32 %v1571_v43, %v1475_v27  ;;  %v1574_v19 = vmul.f32 0.1, %v2290_v48  ;;  %v1402_v42 = vpop.permute.xlu0 %1401  ;;  %v2313_v48 = vld [vmem:[%s3108_s11 + $0x78] sm:$0xff]  }
 0x1c0   : > { %v2523_v20 = vpop.f32.mrf.mxu1  ;;  %v2293_v57 = vunpack.c.l.bf16 %v2312_v36 }
 0x1c1   : > { %v1476_v5 = vmul.f32 0.9, %v1444_v32  ;;  %v1106_v61 = vadd.f32 %v2522_v34, %v3198_v53  ;;  %v1573_v53 = vmul.f32 0.1, %v2289_v17 }
 0x1c2   : > { %v2524_v6 = vpop.f32.mrf.mxu1 }
 0x1c3   : > { %v1445_v10 = vmul.f32 %v1392_v3, %v1106_v61  ;;  %v2525_v52 = vadd.f32 %v2524_v6, %v2523_v20  ;;  %v3394_v55 = vadd.f32 %v1572_v40, %v1476_v5  ;;  %v1407_v20 = vpop.permute.xlu1 %1406 }
 0x1c4   : > { %v2526_v59 = vpop.f32.mrf.mxu1 }
 0x1c5   : > { %v1109_v11 = vadd.f32 %v2525_v52, %v3200_v58  ;;  %v1623_v33 = vpack.c.bf16 %v3394_v55, %v3392_v60  ;;  %v1477_v30 = vmul.f32 0.9, %v1445_v10  ;;  %v2294_v58 = vunpack.c.h.bf16 %v2312_v36 }
 0x1c6   : > { %v2527_v25 = vpop.f32.mrf.mxu1 }
 0x1c7   : > { %v1446_v2 = vmul.f32 %v1397_v28, %v1109_v11  ;;  %v2528_v35 = vadd.f32 %v2527_v25, %v2526_v59  ;;  %2602 = vmatprep.mubr.bf16.mxu0 %v1623_v33  ;;  %v3401_v27 = vadd.f32 %v1573_v53, %v1477_v30  ;;  %v1576_v17 = vmul.f32 0.1, %v2294_v58  ;;  %v1412_v11 = vpop.permute.xlu0 %1411  ;;  %v1417_v36 = vpop.permute.xlu1 %1416 }
 0x1c8   : > { %v2529_v50 = vpop.f32.mrf.mxu1  ;;  %v2297_v28 = vunpack.c.l.bf16 %v2313_v48 }
 0x1c9   : > { %v1478_v21 = vmul.f32 0.9, %v1446_v2  ;;  %v1114_v47 = vadd.f32 %v2528_v35, %v3202_v63  ;;  %v1575_v63 = vmul.f32 0.1, %v2293_v57 }
 0x1ca   : > { %v2530_v46 = vpop.f32.mrf.mxu1 }
 0x1cb   : > { %v1447_v44 = vmul.f32 %v1402_v42, %v1114_v47  ;;  %v2531_v43 = vadd.f32 %v2530_v46, %v2529_v50  ;;  %v3403_v32 = vadd.f32 %v1574_v19, %v1478_v21 }
 0x1cc   : > { %v2532_v34 = vpop.f32.mrf.mxu1 }
 0x1cd   : > { %v1117_v40 = vadd.f32 %v2531_v43, %v3206_v4  ;;  %v1624_v51 = vpack.c.bf16 %v3403_v32, %v3401_v27  ;;  %v1479_v61 = vmul.f32 0.9, %v1447_v44  ;;  %v2298_v4 = vunpack.c.h.bf16 %v2313_v48 }
 0x1ce   : > { %v2533_v5 = vpop.f32.mrf.mxu1 }
 0x1cf   : > { %v1448_v3 = vmul.f32 %v1407_v20, %v1117_v40  ;;  %v2534_v6 = vadd.f32 %v2533_v5, %v2532_v34  ;;  %2603 = vmatmul.mubr.bf16.gmra.mxu0 %v1624_v51  ;;  %v3410_v30 = vadd.f32 %v1575_v63, %v1479_v61  ;;  %v1578_v47 = vmul.f32 0.1, %v2298_v4  ;;  %v3428_v34 = vld [vmem:[%s3587_s5] ss:$0 sm:$0xff] }
 0x1d0   : > { %v2535_v10 = vpop.f32.mrf.mxu1  ;;  %v1852_v20 = vmul.f32 0.5945349, %v3238_v62  ;;  %v1853_v62 = vmul.f32 0.5945349, %v3240_v1 }
 0x1d1   : > { %v1480_v52 = vmul.f32 0.9, %v1448_v3  ;;  %v1122_v59 = vadd.f32 %v2534_v6, %v3212_v9  ;;  %v1577_v9 = vmul.f32 0.1, %v2297_v28  ;;  %v1855_v6 = vmul.f32 0.5945349, %v3258_v39 }
 0x1d2   : > { %v2536_v33 = vpop.f32.mrf.mxu1  ;;  %v1858_v28 = vmul.f32 0.5945349, %v3294_v54 }
 0x1d3   : > { %v1449_v25 = vmul.f32 %v1412_v11, %v1122_v59  ;;  %v2537_v53 = vadd.f32 %v2536_v33, %v2535_v10  ;;  %v3412_v2 = vadd.f32 %v1576_v17, %v1480_v52 }
 0x1d5   : > { %v1125_v35 = vadd.f32 %v2537_v53, %v3218_v14  ;;  %v1625_v19 = vpack.c.bf16 %v3412_v2, %v3410_v30  ;;  %v1481_v50 = vmul.f32 0.9, %v1449_v25  ;;  %v1854_v14 = vmul.f32 0.5945349, %v3256_v37 }
 0x1d7   : > { %v1450_v21 = vmul.f32 %v1417_v36, %v1125_v35  ;;  %2606 = vmatprep.mubr.bf16.mxu0 %v1625_v19  ;;  %v3417_v46 = vadd.f32 %v1577_v9, %v1481_v50  ;;  %v1856_v35 = vmul.f32 0.5945349, %v3275_v22 }
 0x1d9   : > { %v1482_v42 = vmul.f32 0.9, %v1450_v21  ;;  %v1859_v21 = vmul.f32 0.5945349, %v3296_v56  ;;  %v1862_v56 = vmul.f32 0.5945349, %v3326_v29 }
 0x1db   : > { %v3419_v57 = vadd.f32 %v1578_v47, %v1482_v42 }
 0x1dd   : > { %v1626_v58 = vpack.c.bf16 %v3419_v57, %v3417_v46 }
 0x1df   : > { %2607 = vmatmul.mubr.bf16.gmra.mxu0 %v1626_v58  ;;  %v1857_v58 = vmul.f32 0.5945349, %v3277_v24 }
 0x22f   : > { %v2580_v44 = vpop.f32.mrf.mxu0 }
 0x230   : > { %v1886_v43 = vmul.f32 0.4054651, %v2580_v44 }
 0x231   : > { %v1725_v40 = vpop.f32.mrf.mxu0 }
 0x232   : > { %v1918_v51 = vadd.f32 %v1886_v43, %v1854_v14  ;;  %v1884_v5 = vmul.f32 0.4054651, %v1725_v40 }
 0x233   : > { %v2581_v63 = vpop.f32.mrf.mxu0 }
 0x234   : > { %v1957_v61 = vadd.f32 %v3428_v34, %v1918_v51  ;;  %v1916_v3 = vadd.f32 %v1884_v5, %v1852_v20  ;;  %v1887_v17 = vmul.f32 0.4054651, %v2581_v63  ;;  %v1860_v63 = vmul.f32 0.5945349, %v3311_v41 }
 0x235   : > { %v1728_v48 = vpop.f32.mrf.mxu0 }
 0x236   : > { %1989 = vst [vmem:[%s3433_s8 + $0x10] sm:$0xff] %v1957_v61  ;;  %v1955_v37 = vadd.f32 %v3428_v34, %v1916_v3  ;;  %v1919_v10 = vadd.f32 %v1887_v17, %v1855_v6  ;;  %v1885_v52 = vmul.f32 0.4054651, %v1728_v48  ;;  %v1863_v17 = vmul.f32 0.5945349, %v3328_v15 }
 0x237   : > { %v1866_v15 = vmul.f32 0.5945349, %v3350_v7 }
 0x238   : > { %1987 = vst [vmem:[%s3433_s8] sm:$0xff] %v1955_v37  ;;  %v1958_v59 = vadd.f32 %v3428_v34, %v1919_v10  ;;  %v1917_v11 = vadd.f32 %v1885_v52, %v1853_v62  ;;  %v1861_v62 = vmul.f32 0.5945349, %v3313_v45 }
 0x23a   : > { %1990 = vst [vmem:[%s3433_s8 + $0x18] sm:$0xff] %v1958_v59  ;;  %v1956_v39 = vadd.f32 %v3428_v34, %v1917_v11 }
 0x23c   : > { %1988 = vst [vmem:[%s3433_s8 + $0x8] sm:$0xff] %v1956_v39 }
 0x23f   : > { %v2584_v33 = vpop.f32.mrf.mxu0 }
 0x240   : > { %v1890_v4 = vmul.f32 0.4054651, %v2584_v33 }
 0x241   : > { %v1741_v25 = vpop.f32.mrf.mxu0 }
 0x242   : > { %v1922_v53 = vadd.f32 %v1890_v4, %v1858_v28  ;;  %v1888_v1 = vmul.f32 0.4054651, %v1741_v25  ;;  %v1864_v25 = vmul.f32 0.5945349, %v3339_v13 }
 0x243   : > { %v2585_v19 = vpop.f32.mrf.mxu0 }
 0x244   : > { %v1961_v36 = vadd.f32 %v3428_v34, %v1922_v53  ;;  %v1920_v50 = vadd.f32 %v1888_v1, %v1856_v35  ;;  %v1891_v9 = vmul.f32 0.4054651, %v2585_v19  ;;  %v1867_v19 = vmul.f32 0.5945349, %v3352_v23 }
 0x245   : > { %v1744_v47 = vpop.f32.mrf.mxu0  ;;  %v1870_v23 = vmul.f32 0.5945349, %v3368_v38 }
 0x246   : > { %1993 = vst [vmem:[%s3433_s8 + $0x30] sm:$0xff] %v1961_v36  ;;  %v1959_v54 = vadd.f32 %v3428_v34, %v1920_v50  ;;  %v1923_v42 = vadd.f32 %v1891_v9, %v1859_v21  ;;  %v1889_v44 = vmul.f32 0.4054651, %v1744_v47  ;;  %v1865_v9 = vmul.f32 0.5945349, %v3341_v16 }
 0x248   : > { %1991 = vst [vmem:[%s3433_s8 + $0x20] sm:$0xff] %v1959_v54  ;;  %v1962_v22 = vadd.f32 %v3428_v34, %v1923_v42  ;;  %v1921_v14 = vadd.f32 %v1889_v44, %v1857_v58 }
 0x24a   : > { %1994 = vst [vmem:[%s3433_s8 + $0x38] sm:$0xff] %v1962_v22  ;;  %v1960_v43 = vadd.f32 %v3428_v34, %v1921_v14 }
 0x24c   : > { %1992 = vst [vmem:[%s3433_s8 + $0x28] sm:$0xff] %v1960_v43  ;;  %v1868_v43 = vmul.f32 0.5945349, %v3361_v31 }
 0x24f   : > { %v2588_v40 = vpop.f32.mrf.mxu0 }
 0x250   : > { %v1894_v51 = vmul.f32 0.4054651, %v2588_v40 }
 0x251   : > { %v1757_v20 = vpop.f32.mrf.mxu0 }
 0x252   : > { %v1926_v5 = vadd.f32 %v1894_v51, %v1862_v56  ;;  %v1892_v24 = vmul.f32 0.4054651, %v1757_v20  ;;  %v1871_v20 = vmul.f32 0.5945349, %v3370_v12  ;;  %v1874_v12 = vmul.f32 0.5945349, %v3383_v26 }
 0x253   : > { %v2589_v61 = vpop.f32.mrf.mxu0 }
 0x254   : > { %v1965_v3 = vadd.f32 %v3428_v34, %v1926_v5  ;;  %v1924_v6 = vadd.f32 %v1892_v24, %v1860_v63  ;;  %v1895_v48 = vmul.f32 0.4054651, %v2589_v61  ;;  %v1869_v61 = vmul.f32 0.5945349, %v3363_v0 }
 0x255   : > { %v1760_v37 = vpop.f32.mrf.mxu0 }
 0x256   : > { %1997 = vst [vmem:[%s3433_s8 + $0x50] sm:$0xff] %v1965_v3  ;;  %v1963_v29 = vadd.f32 %v3428_v34, %v1924_v6  ;;  %v1927_v10 = vadd.f32 %v1895_v48, %v1863_v17  ;;  %v1893_v52 = vmul.f32 0.4054651, %v1760_v37 }
 0x258   : > { %1995 = vst [vmem:[%s3433_s8 + $0x40] sm:$0xff] %v1963_v29  ;;  %v1966_v41 = vadd.f32 %v3428_v34, %v1927_v10  ;;  %v1925_v59 = vadd.f32 %v1893_v52, %v1861_v62  ;;  %v1872_v62 = vmul.f32 0.5945349, %v3375_v49 }
 0x25a   : > { %1998 = vst [vmem:[%s3433_s8 + $0x58] sm:$0xff] %v1966_v41  ;;  %v1964_v11 = vadd.f32 %v3428_v34, %v1925_v59 }
 0x25c   : > { %1996 = vst [vmem:[%s3433_s8 + $0x48] sm:$0xff] %v1964_v11  ;;  %v1875_v11 = vmul.f32 0.5945349, %v3385_v18  ;;  %v1878_v18 = vmul.f32 0.5945349, %v3401_v27 }
 0x25f   : > { %v2592_v39 = vpop.f32.mrf.mxu0 }
 0x260   : > { %v1898_v33 = vmul.f32 0.4054651, %v2592_v39 }
 0x261   : > { %v1773_v28 = vpop.f32.mrf.mxu0 }
 0x262   : > { %v1930_v4 = vadd.f32 %v1898_v33, %v1866_v15  ;;  %v1896_v45 = vmul.f32 0.4054651, %v1773_v28  ;;  %v1873_v28 = vmul.f32 0.5945349, %v3377_v8 }
 0x263   : > { %v2593_v53 = vpop.f32.mrf.mxu0 }
 0x264   : > { %v1969_v35 = vadd.f32 %v3428_v34, %v1930_v4  ;;  %v1928_v1 = vadd.f32 %v1896_v45, %v1864_v25  ;;  %v1899_v36 = vmul.f32 0.4054651, %v2593_v53 }
 0x265   : > { %v1776_v50 = vpop.f32.mrf.mxu0 }
 0x266   : > { %2001 = vst [vmem:[%s3433_s8 + $0x70] sm:$0xff] %v1969_v35  ;;  %v1967_v7 = vadd.f32 %v3428_v34, %v1928_v1  ;;  %v1931_v21 = vadd.f32 %v1899_v36, %v1867_v19  ;;  %v1897_v47 = vmul.f32 0.4054651, %v1776_v50  ;;  %v1876_v36 = vmul.f32 0.5945349, %v3392_v60 }
 0x268   : > { %1999 = vst [vmem:[%s3433_s8 + $0x60] sm:$0xff] %v1967_v7  ;;  %v1970_v13 = vadd.f32 %v3428_v34, %v1931_v21  ;;  %v1929_v54 = vadd.f32 %v1897_v47, %v1865_v9  ;;  %v1879_v9 = vmul.f32 0.5945349, %v3403_v32  ;;  %v1882_v32 = vmul.f32 0.5945349, %v3417_v46 }
 0x26a   : > { %2002 = vst [vmem:[%s3433_s8 + $0x78] sm:$0xff] %v1970_v13  ;;  %v1968_v42 = vadd.f32 %v3428_v34, %v1929_v54 }
 0x26c   : > { %2000 = vst [vmem:[%s3433_s8 + $0x68] sm:$0xff] %v1968_v42  ;;  %v1877_v42 = vmul.f32 0.5945349, %v3394_v55  ;;  %v1880_v55 = vmul.f32 0.5945349, %v3410_v30 }
 0x26f   : > { %v2596_v58 = vpop.f32.mrf.mxu0 }
 0x270   : > { %v1902_v44 = vmul.f32 0.4054651, %v2596_v58 }
 0x271   : > { %v1789_v22 = vpop.f32.mrf.mxu0 }
 0x272   : > { %v1934_v14 = vadd.f32 %v1902_v44, %v1870_v23  ;;  %v1900_v16 = vmul.f32 0.4054651, %v1789_v22 }
 0x273   : > { %v2597_v40 = vpop.f32.mrf.mxu0 }
 0x274   : > { %v1973_v56 = vadd.f32 %v3428_v34, %v1934_v14  ;;  %v1932_v51 = vadd.f32 %v1900_v16, %v1868_v43  ;;  %v1903_v5 = vmul.f32 0.4054651, %v2597_v40 }
 0x275   : > { %v1792_v63 = vpop.f32.mrf.mxu0 }
 0x276   : > { %2005 = vst [vmem:[%s3433_s8 + $0x90] sm:$0xff] %v1973_v56  ;;  %v1971_v38 = vadd.f32 %v3428_v34, %v1932_v51  ;;  %v1935_v24 = vadd.f32 %v1903_v5, %v1871_v20  ;;  %v1901_v3 = vmul.f32 0.4054651, %v1792_v63  ;;  %v1883_v5 = vmul.f32 0.5945349, %v3419_v57 }
 0x278   : > { %2003 = vst [vmem:[%s3433_s8 + $0x80] sm:$0xff] %v1971_v38  ;;  %v1974_v31 = vadd.f32 %v3428_v34, %v1935_v24  ;;  %v1933_v6 = vadd.f32 %v1901_v3, %v1869_v61  ;;  %v1881_v61 = vmul.f32 0.5945349, %v3412_v2 }
 0x27a   : > { %2006 = vst [vmem:[%s3433_s8 + $0x98] sm:$0xff] %v1974_v31  ;;  %v1972_v17 = vadd.f32 %v3428_v34, %v1933_v6 }
 0x27c   : > { %2004 = vst [vmem:[%s3433_s8 + $0x88] sm:$0xff] %v1972_v17 }
 0x27f   : > { %v2600_v48 = vpop.f32.mrf.mxu0 }
 0x280   : > { %v1906_v37 = vmul.f32 0.4054651, %v2600_v48 }
 0x281   : > { %v1805_v29 = vpop.f32.mrf.mxu0 }
 0x282   : > { %v1938_v10 = vadd.f32 %v1906_v37, %v1874_v12  ;;  %v1904_v0 = vmul.f32 0.4054651, %v1805_v29 }
 0x283   : > { %v2601_v52 = vpop.f32.mrf.mxu0 }
 0x284   : > { %v1977_v41 = vadd.f32 %v3428_v34, %v1938_v10  ;;  %v1936_v59 = vadd.f32 %v1904_v0, %v1872_v62  ;;  %v1907_v39 = vmul.f32 0.4054651, %v2601_v52 }
 0x285   : > { %v1808_v15 = vpop.f32.mrf.mxu0 }
 0x286   : > { %2009 = vst [vmem:[%s3433_s8 + $0xb0] sm:$0xff] %v1977_v41  ;;  %v1975_v26 = vadd.f32 %v3428_v34, %v1936_v59  ;;  %v1939_v33 = vadd.f32 %v1907_v39, %v1875_v11  ;;  %v1905_v4 = vmul.f32 0.4054651, %v1808_v15 }
 0x288   : > { %2007 = vst [vmem:[%s3433_s8 + $0xa0] sm:$0xff] %v1975_v26  ;;  %v1978_v49 = vadd.f32 %v3428_v34, %v1939_v33  ;;  %v1937_v25 = vadd.f32 %v1905_v4, %v1873_v28 }
 0x28a   : > { %2010 = vst [vmem:[%s3433_s8 + $0xb8] sm:$0xff] %v1978_v49  ;;  %v1976_v45 = vadd.f32 %v3428_v34, %v1937_v25 }
 0x28c   : > { %2008 = vst [vmem:[%s3433_s8 + $0xa8] sm:$0xff] %v1976_v45 }
 0x28f   : > { %v2604_v53 = vpop.f32.mrf.mxu0 }
 0x290   : > { %v1910_v35 = vmul.f32 0.4054651, %v2604_v53 }
 0x291   : > { %v1821_v1 = vpop.f32.mrf.mxu0 }
 0x292   : > { %v1942_v19 = vadd.f32 %v1910_v35, %v1878_v18  ;;  %v1908_v8 = vmul.f32 0.4054651, %v1821_v1 }
 0x293   : > { %v2605_v50 = vpop.f32.mrf.mxu0 }
 0x294   : > { %v1981_v7 = vadd.f32 %v3428_v34, %v1942_v19  ;;  %v1940_v21 = vadd.f32 %v1908_v8, %v1876_v36  ;;  %v1911_v47 = vmul.f32 0.4054651, %v2605_v50 }
 0x295   : > { %v1824_v13 = vpop.f32.mrf.mxu0 }
 0x296   : > { %2013 = vst [vmem:[%s3433_s8 + $0xd0] sm:$0xff] %v1981_v7  ;;  %v1979_v27 = vadd.f32 %v3428_v34, %v1940_v21  ;;  %v1943_v54 = vadd.f32 %v1911_v47, %v1879_v9  ;;  %v1909_v58 = vmul.f32 0.4054651, %v1824_v13 }
 0x298   : > { %2011 = vst [vmem:[%s3433_s8 + $0xc0] sm:$0xff] %v1979_v27  ;;  %v1982_v60 = vadd.f32 %v3428_v34, %v1943_v54  ;;  %v1941_v23 = vadd.f32 %v1909_v58, %v1877_v42 }
 0x29a   : > { %2014 = vst [vmem:[%s3433_s8 + $0xd8] sm:$0xff] %v1982_v60  ;;  %v1980_v44 = vadd.f32 %v3428_v34, %v1941_v23 }
 0x29c   : > { %2012 = vst [vmem:[%s3433_s8 + $0xc8] sm:$0xff] %v1980_v44 }
 0x29f   : > { %v2608_v22 = vpop.f32.mrf.mxu0 }
 0x2a0   : > { %v1914_v14 = vmul.f32 0.4054651, %v2608_v22 }
 0x2a1   : > { %v1837_v43 = vpop.f32.mrf.mxu0 }
 0x2a2   : > { %v1946_v16 = vadd.f32 %v1914_v14, %v1882_v32  ;;  %v1912_v40 = vmul.f32 0.4054651, %v1837_v43 }
 0x2a3   : > { %v2609_v56 = vpop.f32.mrf.mxu0 }
 0x2a4   : > { %v1985_v51 = vadd.f32 %v3428_v34, %v1946_v16  ;;  %v1944_v20 = vadd.f32 %v1912_v40, %v1880_v55  ;;  %v1915_v63 = vmul.f32 0.4054651, %v2609_v56 }
 0x2a5   : > { %v1840_v38 = vpop.f32.mrf.mxu0 }
 0x2a6   : > { %2017 = vst [vmem:[%s3433_s8 + $0xf0] sm:$0xff] %v1985_v51  ;;  %v1983_v46 = vadd.f32 %v3428_v34, %v1944_v20  ;;  %v1947_v24 = vadd.f32 %v1915_v63, %v1883_v5  ;;  %v1913_v30 = vmul.f32 0.4054651, %v1840_v38 }
 0x2a8   : > { %2015 = vst [vmem:[%s3433_s8 + $0xe0] sm:$0xff] %v1983_v46  ;;  %v1986_v3 = vadd.f32 %v3428_v34, %v1947_v24  ;;  %v1945_v31 = vadd.f32 %v1913_v30, %v1881_v61 }
 0x2aa   : > { %2018 = vst [vmem:[%s3433_s8 + $0xf8] sm:$0xff] %v1986_v3  ;;  %v1984_v2 = vadd.f32 %v3428_v34, %v1945_v31 }
 0x2ac   : > { %2016 = vst [vmem:[%s3433_s8 + $0xe8] sm:$0xff] %v1984_v2 }
 0x2ad   : > { %2849 = shalt.err (!%p2846_p0)
}
 0x2ae   : > { %s2850_s17 = scalar_lea.hbm %s3529_s21, 4096  ;;  %s2854_s28 = scalar_lea.hbm %s3588_s6, 8192 }
 0x2af   : > { %p2851_p9 = scmp.ne.s32.totalorder %s3529_s21, %s2850_s17  ;;  %p2855_p2 = scmp.lt.s32.totalorder %s3529_s21, %s3588_s6 }
 0x2b0   : > { %p2856_p11 = scmp.lt.s32.totalorder %s2854_s28, %s2850_s17 }
 0x2b1   : > { %p2852_p7 = pnand %p2851_p9, %p3617_p1 }
 0x2b2   : > { %p2857_p6 = por %p2856_p11, %p2855_p2 }
 0x2b3   : > { %p2853_p12 = pneg %p2852_p7 }
 0x2b5   : > { %p2858_p5 = pnand %p2857_p6, %p2853_p12 }
 0x2b7   : > { %2861 = shalt.err (!%p2858_p5)
}
 0x2b8   : > { %s2933_s12 = smov 128   ;;  %s2934_s4 = smov 8  }
 0x2b9   : > { %2636 = dma.vmem_to_hbm [thread:$0]  (%p3617_p1), %s3531_s13, 4096, %s3529_s21, %s2020_s24, %s2933_s12, %s2933_s12, %s2934_s4  }
 0x2ba PF: > { %s3618_s8 = sld [smem:[#allocation14_spill]] }
 0x2bb   : > { %s3619_s1 = sld [smem:[#allocation16_spill]] }
 0x2bc   : > { %s3620_s16 = sld [smem:[#allocation15_spill]] }
 0x2c0   : > { %s2048_s11 = sand.u32 1, %s3618_s8  }
 0x2c1   : > { %p3621_p4 = scmp.ne.s32.totalorder %s3619_s1, 0  ;;  %s2049_s27 = scalar_lea.sflag [#allocation5], %s2048_s11 }
 0x2c2   : > { %p3622_p3 = scmp.ge.s32.totalorder %s3620_s16, 2 }
 0x2c4   : > { %p2650_p8 = pnand %p3622_p3, %p3621_p4 }
 0x2c6   : > { %p2651_p10 = pneg %p2650_p8 }
 0x2c8   : > { %2899 = dma.done.wait (%p2651_p10), %s2049_s27, 4096  }
 0x2c9   : > { %2901 = vsyncadd (%p2651_p10), %s2049_s27, 4294963200  ;;  %s23_s26 = sadd.s32 1, %s3620_s16   ;;  %s3623_s21 = smov %s2908_s22 }
 0x2ca   : > { %p20_p13 = scmp.ge.s32.totalorder %s23_s26, 4   ;;  %s3624_s22 = smov %s2912_s23 }
 0x2cb   : > { %s3625_s23 = smov %s3088_s20  ;;  %s3626_s24 = smov %s2920_s25 }
 0x2cc   : > { %s3627_s25 = smov %s3629_s14  ;;  %22 = sbr.rel (!%p20_p13) target bundleno = 10 (0xa), region = 113 }
 0x2d1   :  { %2054 = vsyncpa [#allocation4], 1 }
 0x2d2   :  { %2056 = vsyncpa [#allocation4 + $0x1], 1 }
 0x2d3   :  { %2057 = vsyncpa [#allocation7], 1 }
 0x2d4   :  { %2059 = vsyncpa [#allocation7 + $0x1], 1 }
 0x2d5   :  { %2060 = vsyncpa [#allocation5], 1 }
 0x2d6   :  { %2062 = vsyncpa [#allocation5 + $0x1], 1 }

</bundles_post_ra>
